<compile_context>
chip_gen: v7x
topology: tpu7x:2x2x1
jax: 0.10.0
libtpu: 0.0.40
codegen_flags: <defaults>
</compile_context>

<pallas_src>
import functools
import math

import jax
import jax.numpy as jnp
from jax import lax
from jax.experimental import pallas as pl
from jax.experimental.pallas import tpu as pltpu

BN_EPS = 1e-5
L2_EPS = 1e-6


# ---------------------------------------------------------------------------
# helpers
# ---------------------------------------------------------------------------
def _pick_tile(dim, target, quantum):
    """Largest multiple of `quantum` <= target that divides `dim`, else `dim`."""
    t = min(dim, target)
    t -= t % quantum
    while t >= quantum:
        if dim % t == 0:
            return t
        t -= quantum
    # TODO(synk): fallback returns the full dim for awkward shapes; pad instead
    # if this ever exceeds the VMEM budget at production sizes.
    return dim


def _vmem_cap_bytes():
    """75% of physical VMEM per core (generation-aware; valid on v7x's 64 MiB)."""
    try:
        return int(0.75 * pltpu.get_tpu_info().vmem_capacity_bytes)
    except Exception:  # interpret mode / older runtimes
        return 48 * 1024 * 1024


def _vmem_limit(estimate_bytes):
    """Explicit scoped-VMEM budget: 2x estimated working set, clamped to HW."""
    return int(min(max(2 * estimate_bytes, 8 * 1024 * 1024), _vmem_cap_bytes()))


# ---------------------------------------------------------------------------
# Kernel 1: partial BatchNorm1d statistics over the (B*N, K) assignment logits
#   grid = (SPLIT, steps): SPLIT "parallel" (v7x megacore), steps "arbitrary".
# ---------------------------------------------------------------------------
def bn_stats_kernel(x_ref, cw_ref, out_ref, sum_ref, sq_ref, *, matmul_dtype):
    t = pl.program_id(1)

    @pl.when(t == 0)
    def _init():
        sum_ref[...] = jnp.zeros_like(sum_ref)
        sq_ref[...] = jnp.zeros_like(sq_ref)

    logits = jnp.dot(x_ref[...].astype(matmul_dtype),
                     cw_ref[...].astype(matmul_dtype),
                     preferred_element_type=jnp.float32)            # (tm, K)
    sum_ref[...] += jnp.sum(logits, axis=0, keepdims=True)
    sq_ref[...] += jnp.sum(logits * logits, axis=0, keepdims=True)

    @pl.when(t == pl.num_programs(1) - 1)
    def _finalize():
        out_ref[0:1, :] = sum_ref[...]
        out_ref[1:2, :] = sq_ref[...]


# ---------------------------------------------------------------------------
# Kernel 2: assignment -> BN -> softmax -> VLAD aggregation -> fused L2 norms
#   grid = (B, N // tn):  B "parallel", N "arbitrary" reduction.
#   Output is (B, K, F): F (lane dim) last -> lane-dense stores.
# ---------------------------------------------------------------------------
def vlad_kernel(x_ref, cw_ref, stat_ref, cw2_ref, out_ref, asum_ref, *, matmul_dtype):
    n = pl.program_id(1)

    x = x_ref[...]                                                   # (tn, F)
    logits = jnp.dot(x.astype(matmul_dtype), cw_ref[...].astype(matmul_dtype),
                     preferred_element_type=jnp.float32)             # (tn, K)
    act = logits * stat_ref[0:1, :] + stat_ref[1:2, :]               # fused BatchNorm1d
    act = act - jnp.max(act, axis=-1, keepdims=True)                 # softmax over clusters
    e = jnp.exp(act)
    p = e / jnp.sum(e, axis=-1, keepdims=True)                       # (tn, K)

    @pl.when(n == 0)
    def _init():
        out_ref[...] = jnp.zeros_like(out_ref)
        asum_ref[...] = jnp.zeros_like(asum_ref)

    asum_ref[...] += jnp.sum(p, axis=0, keepdims=True)               # (1, K)
    # vlad[k, f] += sum_n p[n, k] * x[n, f]   (accumulated in the resident out block)
    out_ref[...] += jnp.einsum("nk,nf->kf",
                               p.astype(matmul_dtype), x.astype(matmul_dtype),
                               preferred_element_type=jnp.float32)   # (K, F)

    @pl.when(n == pl.num_programs(1) - 1)
    def _finalize():
        vlad0 = out_ref[...] - asum_ref[...].T * cw2_ref[...].astype(jnp.float32)
        # Fused intra (over F) + global L2 normalization: one multiply pass.
        nrm2 = jnp.sum(vlad0 * vlad0, axis=-1, keepdims=True)        # (K, 1)
        inv_nrm = 1.0 / jnp.maximum(jnp.sqrt(nrm2), L2_EPS)          # (K, 1)
        tot2 = jnp.sum(nrm2 * (inv_nrm * inv_nrm), keepdims=True)    # (1, 1)
        inv_tot = 1.0 / jnp.maximum(jnp.sqrt(tot2), L2_EPS)
        out_ref[...] = vlad0 * (inv_nrm * inv_tot)


# ---------------------------------------------------------------------------
# Kernel 3a: hidden projection partial sums, contraction split over 2 cores
#   grid = (SPLIT, (FK/SPLIT) // tk): SPLIT "parallel", tk-steps "arbitrary".
# ---------------------------------------------------------------------------
def head_partial_kernel(v_ref, hw_ref, out_ref, *, matmul_dtype):
    k = pl.program_id(1)

    @pl.when(k == 0)
    def _init():
        out_ref[...] = jnp.zeros_like(out_ref)

    out_ref[...] += jnp.dot(v_ref[...].astype(matmul_dtype),
                            hw_ref[...].astype(matmul_dtype),
                            preferred_element_type=jnp.float32)      # (B, D)


# ---------------------------------------------------------------------------
# Kernel 3b: combine partials -> BN2 -> context gating (matmul -> BN -> sigmoid)
#   NOTE: batch statistics require the full B resident in one block (never tiled).
# ---------------------------------------------------------------------------
def head_finalize_kernel(part_ref, gw_ref, g2_ref, b2_ref, gg_ref, gb_ref,
                         out_ref, *, matmul_dtype):
    h = jnp.sum(part_ref[...], axis=0)                               # (B, D) f32
    cnt = float(h.shape[0])
    m = jnp.sum(h, axis=0, keepdims=True) / cnt
    dh = h - m
    var = jnp.sum(dh * dh, axis=0, keepdims=True) / cnt
    h = g2_ref[...] * dh * lax.rsqrt(var + BN_EPS) + b2_ref[...]

    gates = jnp.dot(h.astype(matmul_dtype), gw_ref[...].astype(matmul_dtype),
                    preferred_element_type=jnp.float32)              # (B, D)
    gm = jnp.sum(gates, axis=0, keepdims=True) / cnt
    dg = gates - gm
    gv = jnp.sum(dg * dg, axis=0, keepdims=True) / cnt
    gates = gg_ref[...] * dg * lax.rsqrt(gv + BN_EPS) + gb_ref[...]

    out_ref[...] = h * (1.0 / (1.0 + jnp.exp(-gates)))               # context gating


# ---------------------------------------------------------------------------
# Wrapper
# ---------------------------------------------------------------------------
def netvlad_loupe_forward(x, params, *, matmul_dtype=jnp.float32, bn1_running=None):
    """NetVLADLoupe forward (gating=True, add_norm=True, batch norm).

    matmul_dtype: jnp.bfloat16 recommended for production shapes (halves HBM
    traffic of streamed x / weights, native MXU path, f32 accumulation).
    bn1_running: optional (mean, var) for inference-mode BN1 -> pass 1 skipped.
    """
    B, N, F = x.shape
    K = params["cluster_weights"].shape[1]
    D = params["hidden1_weights"].shape[1]
    FK = F * K
    stream = (matmul_dtype != jnp.float32)
    sd = jnp.dtype(matmul_dtype).itemsize
    cap = _vmem_cap_bytes()

    # ---- one-time parameter transforms (hoist to init in production) ------
    # VLAD is produced in (B, K, F) layout; permute hidden1 rows from torch's
    # f*K+k order to k*F+f so the projection result is identical.
    hidden_w = params["hidden1_weights"].reshape(F, K, D).transpose(1, 0, 2).reshape(FK, D)
    cw2_kf = jnp.transpose(params["cluster_weights2"][0])            # (K, F)
    g1 = params["bn1_gamma"].reshape(1, K)
    b1 = params["bn1_beta"].reshape(1, K)
    cluster_w = params["cluster_weights"]
    gating_w = params["gating_weights"]
    if stream:  # store streamed operands narrow in HBM (halves DMA bytes)
        hidden_w = hidden_w.astype(matmul_dtype)
        cw2_kf = cw2_kf.astype(matmul_dtype)
        cluster_w = cluster_w.astype(matmul_dtype)
        gating_w = gating_w.astype(matmul_dtype)
        x = x.astype(matmul_dtype)

    # ---- pass 1: BN1 batch statistics over the (B*N, K) logits ------------
    rows = B * N
    if bn1_running is not None:
        mean, var = bn1_running
        mean = mean.reshape(1, K).astype(jnp.float32)
        var = var.reshape(1, K).astype(jnp.float32)
    else:
        ncs1 = 2 if rows % 16 == 0 else 1                 # megacore split (v7x)
        steps1_rows = rows // ncs1
        tm = _pick_tile(steps1_rows, 1024, 8)              # big streaming tiles
        steps1 = steps1_rows // tm
        x2d = x.reshape(rows, F)
        stats_est = (2 * tm * F * sd + F * K * sd + 4 * 2 * K * 4 + 4 * 2 * K)
        part = pl.pallas_call(
            functools.partial(bn_stats_kernel, matmul_dtype=matmul_dtype),
            out_shape=jax.ShapeDtypeStruct((ncs1, 2, K), jnp.float32),
            grid=(ncs1, steps1),
            in_specs=[
                pl.BlockSpec((tm, F), lambda c, t, s=steps1: (c * s + t, 0)),
                pl.BlockSpec((F, K), lambda c, t: (0, 0)),
            ],
            out_specs=pl.BlockSpec((None, 2, K), lambda c, t: (c, 0, 0)),
            scratch_shapes=[pltpu.VMEM((1, K), jnp.float32),
                            pltpu.VMEM((1, K), jnp.float32)],
            compiler_params=pltpu.CompilerParams(
                dimension_semantics=("parallel", "arbitrary"),
                vmem_limit_bytes=_vmem_limit(stats_est)),
        )(x2d, cluster_w)
        # tiny (ncs1, 2, K) combine; clamp var against single-pass cancellation
        s = jnp.sum(part[:, 0, :], axis=0)
        sq = jnp.sum(part[:, 1, :], axis=0)
        mean = (s / rows).reshape(1, K)
        var = jnp.maximum(sq / rows - mean * mean, 0.0)
    scale = g1 * lax.rsqrt(var + BN_EPS)
    shift = b1 - mean * scale
    stats = jnp.concatenate([scale, shift], axis=0)                  # (2, K)

    # ---- pass 2: soft assignment + VLAD aggregation + fused L2 norms ------
    tn = _pick_tile(N, 512, 8)                             # big streaming tiles
    vlad_est = (2 * tn * F * sd + F * K * sd + 2 * K * 4 + K * F * sd
                + 2 * K * F * 4 + K * 4)
    vlad = pl.pallas_call(
        functools.partial(vlad_kernel, matmul_dtype=matmul_dtype),
        out_shape=jax.ShapeDtypeStruct((B, K, F), jnp.float32),
        grid=(B, N // tn),
        in_specs=[
            pl.BlockSpec((None, tn, F), lambda b, n: (b, n, 0)),
            pl.BlockSpec((F, K), lambda b, n: (0, 0)),
            pl.BlockSpec((2, K), lambda b, n: (0, 0)),
            pl.BlockSpec((K, F), lambda b, n: (0, 0)),
        ],
        out_specs=pl.BlockSpec((None, K, F), lambda b, n: (b, 0, 0)),
        scratch_shapes=[pltpu.VMEM((1, K), jnp.float32)],
        compiler_params=pltpu.CompilerParams(
            dimension_semantics=("parallel", "arbitrary"),
            vmem_limit_bytes=_vmem_limit(vlad_est)),
    )(x, cluster_w, stats, cw2_kf)

    # glue reshape: (B, K, F) -> (B, K*F), k-major, matching the permuted hidden_w
    vlad_flat = vlad.reshape(B, FK)

    # ---- pass 3a: hidden projection partial sums (weight-streaming bound) --
    ncs3 = 2 if FK % 256 == 0 else 1                       # megacore split (v7x)
    hw_budget = min(cap // 3, 24 * 1024 * 1024)            # double-buffered hw tile
    tk_target = max(128, (hw_budget // (2 * D * sd)) // 128 * 128)
    tk = _pick_tile(FK // ncs3, tk_target, 128)
    steps3 = (FK // ncs3) // tk
    part_est = 2 * (B * tk * 4 + tk * D * sd) + 2 * B * D * 4
    head_part = pl.pallas_call(
        functools.partial(head_partial_kernel, matmul_dtype=matmul_dtype),
        out_shape=jax.ShapeDtypeStruct((ncs3, B, D), jnp.float32),
        grid=(ncs3, steps3),
        in_specs=[
            pl.BlockSpec((B, tk), lambda c, k, s=steps3: (0, c * s + k)),
            pl.BlockSpec((tk, D), lambda c, k, s=steps3: (c * s + k, 0)),
        ],
        out_specs=pl.BlockSpec((None, B, D), lambda c, k: (c, 0, 0)),
        compiler_params=pltpu.CompilerParams(
            dimension_semantics=("parallel", "arbitrary"),
            vmem_limit_bytes=_vmem_limit(part_est)),
    )(vlad_flat, hidden_w)

    # ---- pass 3b: combine + BN2 + context gating ---------------------------
    fin_est = (ncs3 * B * D + D * D + 4 * D + 2 * B * D) * 4
    out = pl.pallas_call(
        functools.partial(head_finalize_kernel, matmul_dtype=matmul_dtype),
        out_shape=jax.ShapeDtypeStruct((B, D), jnp.float32),
        grid=(1,),
        in_specs=[
            pl.BlockSpec((ncs3, B, D), lambda i: (0, 0, 0)),
            pl.BlockSpec((D, D), lambda i: (0, 0)),
            pl.BlockSpec((1, D), lambda i: (0, 0)),
            pl.BlockSpec((1, D), lambda i: (0, 0)),
            pl.BlockSpec((1, D), lambda i: (0, 0)),
            pl.BlockSpec((1, D), lambda i: (0, 0)),
        ],
        out_specs=pl.BlockSpec((B, D), lambda i: (0, 0)),
        compiler_params=pltpu.CompilerParams(
            dimension_semantics=("arbitrary",),
            vmem_limit_bytes=_vmem_limit(fin_est)),
    )(head_part, gating_w,
      params["bn2_gamma"], params["bn2_beta"],
      params["gbn_gamma"], params["gbn_beta"])

    return out


# ---------------------------------------------------------------------------
# Pure-JAX reference (mirrors the PyTorch forward) for self-check
# ---------------------------------------------------------------------------
def reference_forward(x, p):
    B, N, F = x.shape
    K = p["cluster_weights"].shape[1]
    act = jnp.matmul(x, p["cluster_weights"])
    flat = act.reshape(-1, K)
    mean = flat.mean(0)
    var = ((flat - mean) ** 2).mean(0)
    flat = p["bn1_gamma"].reshape(-1) * (flat - mean) / jnp.sqrt(var + BN_EPS) \
        + p["bn1_beta"].reshape(-1)
    act = jax.nn.softmax(flat.reshape(B, N, K), axis=-1)
    a_sum = act.sum(1, keepdims=True)
    a = a_sum * p["cluster_weights2"]
    vlad = jnp.einsum("bnk,bnf->bkf", act, x)
    vlad = jnp.transpose(vlad, (0, 2, 1))                 # (B, F, K)
    vlad0 = vlad - a
    vlad1 = vlad0 / jnp.maximum(
        jnp.sqrt(jnp.sum(vlad0 * vlad0, axis=1, keepdims=True)), L2_EPS)
    vlad2 = vlad1.reshape(B, -1)
    vlad2 = vlad2 / jnp.maximum(
        jnp.sqrt(jnp.sum(vlad2 * vlad2, axis=1, keepdims=True)), L2_EPS)
    h = jnp.matmul(vlad2, p["hidden1_weights"])
    m = h.mean(0); v = ((h - m) ** 2).mean(0)
    h = p["bn2_gamma"].reshape(-1) * (h - m) / jnp.sqrt(v + BN_EPS) + p["bn2_beta"].reshape(-1)
    g = jnp.matmul(h, p["gating_weights"])
    gm = g.mean(0); gv = ((g - gm) ** 2).mean(0)
    g = p["gbn_gamma"].reshape(-1) * (g - gm) / jnp.sqrt(gv + BN_EPS) + p["gbn_beta"].reshape(-1)
    return h * jax.nn.sigmoid(g)


def init_params(key, feature_size, cluster_size, output_dim):
    ks = jax.random.split(key, 5)
    F, K, D = feature_size, cluster_size, output_dim
    return {
        "cluster_weights": jax.random.normal(ks[0], (F, K), jnp.float32) / math.sqrt(F),
        "cluster_weights2": jax.random.normal(ks[1], (1, F, K), jnp.float32) / math.sqrt(F),
        "hidden1_weights": jax.random.normal(ks[2], (K * F, D), jnp.float32) / math.sqrt(F),
        "gating_weights": jax.random.normal(ks[3], (D, D), jnp.float32) / math.sqrt(D),
        # BatchNorm affine params (PyTorch init: weight=1, bias=0)
        "bn1_gamma": jnp.ones((1, 1, K), jnp.float32),
        "bn1_beta": jnp.zeros((1, 1, K), jnp.float32),
        "bn2_gamma": jnp.ones((1, D), jnp.float32),
        "bn2_beta": jnp.zeros((1, D), jnp.float32),
        "gbn_gamma": jnp.ones((1, D), jnp.float32),
        "gbn_beta": jnp.zeros((1, D), jnp.float32),
    }


if __name__ == "__main__":
    # batch=8, num_samples=256, feature_size=128, cluster_size=32, output_dim=64
    # (small NetVLAD-like shapes; every kernel still takes multiple grid steps)
    B, N, F, K, D = 8, 256, 128, 32, 64
    key = jax.random.PRNGKey(0)
    kx, kp = jax.random.split(key)
    x = jax.random.normal(kx, (B, N, F), jnp.float32)
    params = init_params(kp, F, K, D)

    # f32 path: strict check against the reference (small-batch BN is ill-conditioned,
    # so the demo validates in f32; production should use matmul_dtype=bf16).
    out = jax.block_until_ready(netvlad_loupe_forward(x, params))
    ref = jax.block_until_ready(reference_forward(x, params))
    assert out.shape == (B, D)
    assert bool(jnp.all(jnp.isfinite(out)))
    assert bool(jnp.allclose(out, ref, rtol=1e-2, atol=1e-2)), "mismatch vs reference"

    # bf16 streaming/MXU path (production default): smoke check shape/finiteness.
    out_bf16 = jax.block_until_ready(
        netvlad_loupe_forward(x, params, matmul_dtype=jnp.bfloat16))
    assert out_bf16.shape == (B, D)
    assert bool(jnp.all(jnp.isfinite(out_bf16)))

    print("KERNEL_OK")
</pallas_src>

<mosaic_0001>
module attributes {stable_mosaic.version = 11 : i64} {
  func.func @bn_stats_kernel(%arg0: i32, %arg1: i32, %arg2: memref<1024x128xf32, #tpu.memory_space<vmem>>, %arg3: memref<128x32xf32, #tpu.memory_space<vmem>>, %arg4: memref<1x2x32xf32, #tpu.memory_space<vmem>>, %arg5: memref<1x32xf32, #tpu.memory_space<vmem>>, %arg6: memref<1x32xf32, #tpu.memory_space<vmem>>) attributes {dimension_semantics = [#tpu.dimension_semantics<parallel>, #tpu.dimension_semantics<arbitrary>], iteration_bounds = array<i64: 2, 1>, scalar_prefetch = 0 : i64, scratch_operands = 2 : i64, tpu.core_type = #tpu.core_type<tc>, window_params = [{transform_indices = @transform_0, window_bounds = array<i64: 1024, 128>}, {pipeline_mode = #tpu.pipeline_mode<synchronous>, transform_indices = @transform_1, window_bounds = array<i64: 128, 32>}, {transform_indices = @transform_2, window_bounds = array<i64: 1, 2, 32>}]} {
    %c0_i32 = arith.constant 0 : i32
    %0 = arith.cmpi eq, %arg1, %c0_i32 : i32
    %1 = arith.extui %0 : i1 to i32
    %c0_i32_0 = arith.constant 0 : i32
    %2 = arith.cmpi ne, %1, %c0_i32_0 : i32
    scf.if %2 {
      %cst_16 = arith.constant 0.000000e+00 : f32
      %20 = vector.broadcast %cst_16 : f32 to vector<1x32xf32>
      %c0_17 = arith.constant 0 : index
      %c0_18 = arith.constant 0 : index
      %21 = vector.load %arg5[%c0_17, %c0_18] : memref<1x32xf32, #tpu.memory_space<vmem>>, vector<1x32xf32>
      tpu.vector_store %arg5[%c0_17, %c0_18], %20 {strides = array<i32>} : memref<1x32xf32, #tpu.memory_space<vmem>>, vector<1x32xf32>,
      %cst_19 = arith.constant 0.000000e+00 : f32
      %22 = vector.broadcast %cst_19 : f32 to vector<1x32xf32>
      %c0_20 = arith.constant 0 : index
      %c0_21 = arith.constant 0 : index
      %23 = vector.load %arg6[%c0_20, %c0_21] : memref<1x32xf32, #tpu.memory_space<vmem>>, vector<1x32xf32>
      tpu.vector_store %arg6[%c0_20, %c0_21], %22 {strides = array<i32>} : memref<1x32xf32, #tpu.memory_space<vmem>>, vector<1x32xf32>,
    } else {
    }
    %c0 = arith.constant 0 : index
    %c0_1 = arith.constant 0 : index
    %3 = vector.load %arg2[%c0, %c0_1] : memref<1024x128xf32, #tpu.memory_space<vmem>>, vector<1024x128xf32>
    %c0_2 = arith.constant 0 : index
    %c0_3 = arith.constant 0 : index
    %4 = vector.load %arg3[%c0_2, %c0_3] : memref<128x32xf32, #tpu.memory_space<vmem>>, vector<128x32xf32>
    %cst = arith.constant dense<0.000000e+00> : vector<1024x32xf32>
    %5 = tpu.matmul %3, %4, %cst {dimension_numbers = #tpu.dot_dimension_numbers<[1], [0], [0], [1], [0, 0, 1, 1], [], []>} : vector<1024x128xf32>, vector<128x32xf32>, vector<1024x32xf32> -> vector<1024x32xf32>
    %c0_4 = arith.constant 0 : index
    %c0_5 = arith.constant 0 : index
    %6 = vector.load %arg5[%c0_4, %c0_5] : memref<1x32xf32, #tpu.memory_space<vmem>>, vector<1x32xf32>
    %cst_6 = arith.constant dense<0.000000e+00> : vector<32xf32>
    %7 = vector.multi_reduction <add>, %5, %cst_6 [0] : vector<1024x32xf32> to vector<32xf32>
    %8 = vector.shape_cast %7 : vector<32xf32> to vector<1x32xf32>
    %9 = arith.addf %6, %8 : vector<1x32xf32>
    %c0_7 = arith.constant 0 : index
    %c0_8 = arith.constant 0 : index
    %10 = vector.load %arg5[%c0_7, %c0_8] : memref<1x32xf32, #tpu.memory_space<vmem>>, vector<1x32xf32>
    tpu.vector_store %arg5[%c0_7, %c0_8], %9 {strides = array<i32>} : memref<1x32xf32, #tpu.memory_space<vmem>>, vector<1x32xf32>,
    %c0_9 = arith.constant 0 : index
    %c0_10 = arith.constant 0 : index
    %11 = vector.load %arg6[%c0_9, %c0_10] : memref<1x32xf32, #tpu.memory_space<vmem>>, vector<1x32xf32>
    %12 = arith.mulf %5, %5 : vector<1024x32xf32>
    %cst_11 = arith.constant dense<0.000000e+00> : vector<32xf32>
    %13 = vector.multi_reduction <add>, %12, %cst_11 [0] : vector<1024x32xf32> to vector<32xf32>
    %14 = vector.shape_cast %13 : vector<32xf32> to vector<1x32xf32>
    %15 = arith.addf %11, %14 : vector<1x32xf32>
    %c0_12 = arith.constant 0 : index
    %c0_13 = arith.constant 0 : index
    %16 = vector.load %arg6[%c0_12, %c0_13] : memref<1x32xf32, #tpu.memory_space<vmem>>, vector<1x32xf32>
    tpu.vector_store %arg6[%c0_12, %c0_13], %15 {strides = array<i32>} : memref<1x32xf32, #tpu.memory_space<vmem>>, vector<1x32xf32>,
    %c0_i32_14 = arith.constant 0 : i32
    %17 = arith.cmpi eq, %arg1, %c0_i32_14 : i32
    %18 = arith.extui %17 : i1 to i32
    %c0_i32_15 = arith.constant 0 : i32
    %19 = arith.cmpi ne, %18, %c0_i32_15 : i32
    scf.if %19 {
      %c0_16 = arith.constant 0 : index
      %c0_17 = arith.constant 0 : index
      %20 = vector.load %arg5[%c0_16, %c0_17] : memref<1x32xf32, #tpu.memory_space<vmem>>, vector<1x32xf32>
      %c0_18 = arith.constant 0 : index
      %c0_19 = arith.constant 0 : index
      %c0_20 = arith.constant 0 : index
      %21 = vector.load %arg4[%c0_18, %c0_19, %c0_20] : memref<1x2x32xf32, #tpu.memory_space<vmem>>, vector<1x1x32xf32>
      %22 = vector.shape_cast %21 : vector<1x1x32xf32> to vector<1x32xf32>
      %23 = vector.shape_cast %20 : vector<1x32xf32> to vector<1x1x32xf32>
      tpu.vector_store %arg4[%c0_18, %c0_19, %c0_20], %23 {strides = array<i32>} : memref<1x2x32xf32, #tpu.memory_space<vmem>>, vector<1x1x32xf32>,
      %c0_21 = arith.constant 0 : index
      %c0_22 = arith.constant 0 : index
      %24 = vector.load %arg6[%c0_21, %c0_22] : memref<1x32xf32, #tpu.memory_space<vmem>>, vector<1x32xf32>
      %c0_23 = arith.constant 0 : index
      %c1 = arith.constant 1 : index
      %c0_24 = arith.constant 0 : index
      %25 = vector.load %arg4[%c0_23, %c1, %c0_24] : memref<1x2x32xf32, #tpu.memory_space<vmem>>, vector<1x1x32xf32>
      %26 = vector.shape_cast %25 : vector<1x1x32xf32> to vector<1x32xf32>
      %27 = vector.shape_cast %24 : vector<1x32xf32> to vector<1x1x32xf32>
      tpu.vector_store %arg4[%c0_23, %c1, %c0_24], %27 {strides = array<i32>} : memref<1x2x32xf32, #tpu.memory_space<vmem>>, vector<1x1x32xf32>,
    } else {
    }
    return
  }
  func.func @transform_0(%arg0: i32, %arg1: i32) -> (i32, i32) {
    %c1_i32 = arith.constant 1 : i32
    %0 = arith.muli %arg0, %c1_i32 : i32
    %1 = arith.addi %0, %arg1 : i32
    %c0_i32 = arith.constant 0 : i32
    %c0_i32_0 = arith.constant 0 : i32
    return %1, %c0_i32 : i32, i32
  }
  func.func @transform_1(%arg0: i32, %arg1: i32) -> (i32, i32) {
    %c0_i32 = arith.constant 0 : i32
    %c0_i32_0 = arith.constant 0 : i32
    %c0_i32_1 = arith.constant 0 : i32
    return %c0_i32, %c0_i32_0 : i32, i32
  }
  func.func @transform_2(%arg0: i32, %arg1: i32) -> (i32, i32, i32) {
    %c0_i32 = arith.constant 0 : i32
    %c0_i32_0 = arith.constant 0 : i32
    %c0_i32_1 = arith.constant 0 : i32
    return %arg0, %c0_i32, %c0_i32_0 : i32, i32, i32
  }
}

</mosaic_0001>

<bundles_post_ra>
// kernel: tpu_custom_call.1
= control target key start
LH: loop header
LB: loop body
LE: loop exit
PB: predicated region body
PF: predicated region fallthrough
CT: control target
= control target key end

     0   :  { %7 = vsyncpa [#allocation5], 0  ;;  %s3357_s0 = inlined_call_operand.hbm [shape: f32[2048,128], index: 0, kind: input, shape index: {}]   ;;  %s3358_s1 = inlined_call_operand.vmem [shape: f32[128,32], index: 1, kind: input, shape index: {}]   ;;  %s3359_s2 = inlined_call_operand.hbm [shape: f32[2,2,32], index: 2, kind: output, shape index: {}]  }
   0x1   :  { %9 = vsyncpa [#allocation5 + $0x1], 0 }
   0x2   :  { %10 = vsyncpa [#allocation6], 0 }
   0x3   :  { %12 = vsyncpa [#allocation6 + $0x1], 0  ;;  %s2423_s9 = smov 0   ;;  %s2425_s10 = smov 0  }
   0x4   :  { %s2427_s11 = smov 0   ;;  %s2429_s12 = smov 0  }
   0x5   :  { %s2431_s13 = smov 0   ;;  %s2433_s14 = smov 0  }
   0x6 LB: > { %s1793_s15 = sadd.s32 4294967295, %s2401_s14   ;;  %s1794_s16 = sadd.s32 4294967294, %s2401_s14   ;;  %s2401_s14 = sphi %s2433_s14, %s18_s14   ;;  %s2397_s13 = sphi %s2431_s13, %s3428_s13   ;;  %s2393_s12 = sphi %s2429_s12, %s3427_s12   ;;  %s2389_s11 = sphi %s2427_s11, %s3426_s11   ;;  %s2385_s10 = sphi %s2425_s10, %s3425_s10   ;;  %s2381_s9 = sphi %s2423_s9, %s3424_s9  }
   0x7   : > { %s30_s17 = sadd.s32 1, %s2397_s13  ;;  %s39_s18 = sadd.s32 1, %s2389_s11 }
   0x8   : > { %p32_p0 = scmp.ge.s32.totalorder %s30_s17, 2  ;;  %p46_p1 = scmp.ne.s32.totalorder %s2389_s11, %s2385_s10 }
   0x9   : > { %p47_p2 = scmp.eq.s32.totalorder %s2401_s14, 0  ;;  %p52_p3 = scmp.ne.s32.totalorder %s2385_s10, %s2381_s9 }
   0xa   : > { %s3430_s17 = smov (%p32_p0, %s30_s17), 0  ;;  %p53_p5 = scmp.eq.s32.totalorder %s1793_s15, 0 }
   0xb   : > { %p2464_p4 = por %p47_p2, %p46_p1  ;;  %s36_s20 = ssub.s32 %s2397_s13, %s3430_s17 }
   0xc   : > { %p97_p6 = scmp.eq.s32.totalorder %s1793_s15, 1  ;;  %p37_p7 = scmp.eq.s32.totalorder %s36_s20, 0 }
   0xd   : > { %p2470_p8 = por %p53_p5, %p52_p3  ;;  %p103_p10 = scmp.eq.s32.totalorder %s1794_s16, 1 }
   0xe   : > { %p2474_p9 = por %p97_p6, %p46_p1  ;;  %p2236_p13 = scmp.lt.s32.totalorder %s2401_s14, 2 }
   0xf   : > { %s2479_s23 = scalar_select %p37_p7, %s2389_s11, %s39_s18  }
  0x10   : > { %s3381_s22 = scalar_select %p2474_p9, 1, 0 }
  0x11   : > { %p2481_p11 = por %p103_p10, %p52_p3  ;;  %s126_s25 = sand.u32 1, %s2389_s11  }
  0x12   : > { %s1797_s26 = sshll.u32 %s126_s25, 10  ;;  %s1807_s27 = sshll.u32 %s2397_s13, 14 }
  0x13   : > { %s3382_s24 = scalar_select %p2481_p11, 1, 0 }
  0x14   : > { %s2492_s30 = scalar_lea.hbm %s3357_s0, %s1807_s27  ;;  %s130_s3 = scalar_lea.vmem [#allocation4], %s1797_s26 }
  0x15   : > { %s138_s4 = sshll.u32 %s130_s3, 4  ;;  %p2498_p0 = pnand %p2236_p13, %p2464_p4  ;;  %s2494_s4 = int_to_ptr.vmem [resolvable:$true] %s138_s4 }
  0x16   : > { %s2503_s6 = scalar_lea.sflag [#allocation5], %s126_s25  ;;  %s2289_s7 = scalar_lea.hbm %s2492_s30, 16384 }
  0x17   : > { %p2290_p2 = scmp.ne.s32.totalorder %s2492_s30, %s2289_s7  ;;  %p2291_p3 = pneg %p2498_p0 }
  0x18   : > { %s2294_s16 = scalar_lea.hbm %s3357_s0, 32768  ;;  %p2295_p4 = scmp.lt.u32.totalorder %s2492_s30, %s3357_s0 }
  0x19   : > { %p2292_p5 = pnand %p2291_p3, %p2290_p2  ;;  %p2296_p7 = scmp.lt.u32.totalorder %s2294_s16, %s2289_s7 }
  0x1a   : > { %p2298_p13 = scmp.lt.u32.totalorder %s2289_s7, %s2492_s30 }
  0x1b   : > { %p2293_p6 = pneg %p2292_p5  ;;  %p2297_p10 = por %p2296_p7, %p2295_p4 }
  0x1d   : > { %p2299_p12 = por %p2298_p13, %p2297_p10 }
  0x1f   : > { %p2300_p1 = pnand %p2299_p12, %p2293_p6 }
  0x21   : > { %2303 = shalt.err (!%p2300_p1)
}
  0x22   : > { %s2304_s20 = scalar_lea.vmem %s2494_s4, 16384  ;;  %s2403_s25 = smov [#allocation4]  }
  0x23   : > { %p2305_p2 = scmp.ne.s32.totalorder %s2494_s4, %s2304_s20  ;;  %s2309_s26 = sshll.u32 %s2403_s25, 4  ;;  %s2310_s26 = int_to_ptr.vmem [resolvable:$false] %s2309_s26 }
  0x24   : > { %s2311_s27 = scalar_lea.vmem %s2310_s26, 32768  ;;  %p2312_p9 = scmp.lt.s32.totalorder %s2494_s4, %s2310_s26 }
  0x25   : > { %p2307_p5 = pnand %p2305_p2, %p2291_p3  ;;  %p2313_p4 = scmp.lt.s32.totalorder %s2311_s27, %s2304_s20 }
  0x27   : > { %p2308_p11 = pneg %p2307_p5  ;;  %p2314_p7 = por %p2313_p4, %p2312_p9 }
  0x29   : > { %p2315_p10 = pnand %p2314_p7, %p2308_p11 }
  0x2b   : > { %2318 = shalt.err (!%p2315_p10)
}
  0x2c   : > { %s2404_s28 = smov 128   ;;  %s2405_s29 = smov 8  }
  0x2d   : > { %2231 = dma.hbm_to_vmem [thread:$0]  (!%p2498_p0), %s2492_s30, 16384, %s2494_s4, %s2503_s6, %s2404_s28, %s2404_s28, %s2405_s29  }
  0x2e   : > { %p146_p12 = scmp.lt.s32.totalorder %s2401_s14, 3  ;;  %p3384_p1 = scmp.ge.s32.totalorder %s2401_s14, 1 }
  0x30   : > { %p147_p3 = pnand %p3384_p1, %p146_p12 }
  0x32   : > { %150 = sbr.rel (%p147_p3) target bundleno = 604 (0x25c), region = 28 }
  0x39   : > { %s2535_s3 = sand.u32 1, %s2385_s10  }
  0x3a   : > { %s1801_s7 = sshll.u32 %s2535_s3, 10  ;;  %s153_s8 = scalar_lea.sflag [#allocation5], %s2535_s3 }
  0x3b   : > { %s2539_s15 = scalar_lea.vmem [#allocation4], %s1801_s7 }
  0x3c   : > { %2372 = dma.done.wait (%p2470_p8), %s153_s8, 16384  }
  0x3d   : > { %2374 = vsyncadd (%p2470_p8), %s153_s8, 4294950912  ;;  %v314_v0 = vld [vmem:[%s3358_s1] sm:$0xff]  ;;  %v315_v1 = vld [vmem:[%s3358_s1 + $0x8] sm:$0xff]  ;;  %vm1036_vm0 = vcmask 261120   ;;  %vm183_vm1 = vcmask 253952   ;;  %s1804_s30 = sshll.u32 %s2393_s12, 5 }
  0x3e   : > { %v316_v2 = vld [vmem:[%s3358_s1 + $0x10] sm:$0xff]  ;;  %v2176_v3 = vpack.c.bf16 %v315_v1, %v314_v0  ;;  %v317_v4 = vld [vmem:[%s3358_s1 + $0x18] sm:$0xff]  ;;  %v318_v6 = vld [vmem:[%s3358_s1 + $0x20] sm:$0xff]  ;;  %s3307_s18 = scalar_lea.hbm %s3359_s2, %s1804_s30  ;;  %s1701_s19 = scalar_lea.sflag [#allocation6], %s2535_s3 }
  0x3f   : > { %v2180_v5 = vpack.c.bf16 %v317_v4, %v316_v2  ;;  %v319_v7 = vld [vmem:[%s3358_s1 + $0x28] sm:$0xff]  ;;  %v320_v10 = vld [vmem:[%s3358_s1 + $0x30] sm:$0xff]  ;;  %v321_v11 = vld [vmem:[%s3358_s1 + $0x38] sm:$0xff]  ;;  %p3421_p9 = scmp.ne.s32.totalorder %s3381_s22, 0  ;;  %s2407_s20 = smov [#allocation7]  }
  0x40   : > { %2177 = vmatprep.subr.bf16.mxu0 %v2176_v3  ;;  %2208 = vmatprep.subr.bf16.mxu1 %v2176_v3  ;;  %v2184_v8 = vpack.c.bf16 %v319_v7, %v318_v6  ;;  %v186_v9 = vld [vmem:[%s2539_s15] sm:$0xff]  ;;  %v2188_v12 = vpack.c.bf16 %v321_v11, %v320_v10  ;;  %v324_v16 = vld [vmem:[%s3358_s1 + $0x50] sm:$0xff]  ;;  %v325_v17 = vld [vmem:[%s3358_s1 + $0x58] sm:$0xff]  ;;  %s2323_s21 = sshll.u32 %s2407_s20, 4  ;;  %s2324_s21 = int_to_ptr.vmem [resolvable:$false] %s2323_s21 }
  0x41   : > { %2179 = vmatpush3.bf16.msra.mxu0 %v2176_v3  ;;  %2216 = vmatpush3.bf16.msra.mxu1 %v2176_v3  ;;  %v322_v13 = vld [vmem:[%s3358_s1 + $0x40] sm:$0xff]  ;;  %v323_v14 = vld [vmem:[%s3358_s1 + $0x48] sm:$0xff]  ;;  %v2196_v18 = vpack.c.bf16 %v325_v17, %v324_v16  ;;  %v328_v22 = vld [vmem:[%s3358_s1 + $0x70] sm:$0xff]  ;;  %s2325_s25 = scalar_lea.vmem %s2324_s21, 64 }
  0x42   : > { %2181 = vmatprep.subr.bf16.mxu0 %v2180_v5  ;;  %2209 = vmatprep.subr.bf16.mxu1 %v2180_v5  ;;  %v2192_v15 = vpack.c.bf16 %v323_v14, %v322_v13  ;;  %v326_v19 = vld [vmem:[%s3358_s1 + $0x60] sm:$0xff]  ;;  %v327_v20 = vld [vmem:[%s3358_s1 + $0x68] sm:$0xff]  ;;  %v329_v23 = vld [vmem:[%s3358_s1 + $0x78] sm:$0xff] }
  0x43   : > { %1984 = vmatprep.mubr.f32.mxu0 %v186_v9  ;;  %v2200_v21 = vpack.c.bf16 %v327_v20, %v326_v19  ;;  %v2204_v24 = vpack.c.bf16 %v329_v23, %v328_v22  ;;  %v250_v25 = vld [vmem:[%s2539_s15 + $0x200] sm:$0xff]  ;;  %v187_v26 = vld [vmem:[%s2539_s15 + $0x8] sm:$0xff]  ;;  %v188_v28 = vld [vmem:[%s2539_s15 + $0x10] sm:$0xff] }
  0x44   : > { %v251_v27 = vld [vmem:[%s2539_s15 + $0x208] sm:$0xff]  ;;  %2080 = vmatprep.mubr.f32.mxu1 %v250_v25  ;;  %v252_v29 = vld [vmem:[%s2539_s15 + $0x210] sm:$0xff]  ;;  %v189_v30 = vld [vmem:[%s2539_s15 + $0x18] sm:$0xff] }
  0x45   : > { %2183 = vmatpush3.bf16.msra.mxu0 %v2180_v5  ;;  %2217 = vmatpush3.bf16.msra.mxu1 %v2180_v5  ;;  %v253_v31 = vld [vmem:[%s2539_s15 + $0x218] sm:$0xff]  ;;  %v190_v32 = vld [vmem:[%s2539_s15 + $0x20] sm:$0xff]  ;;  %v191_v34 = vld [vmem:[%s2539_s15 + $0x28] sm:$0xff] }
  0x46   : > { %2185 = vmatprep.subr.bf16.mxu0 %v2184_v8  ;;  %2210 = vmatprep.subr.bf16.mxu1 %v2184_v8  ;;  %v254_v33 = vld [vmem:[%s2539_s15 + $0x220] sm:$0xff]  ;;  %v255_v35 = vld [vmem:[%s2539_s15 + $0x228] sm:$0xff]  ;;  %v192_v36 = vld [vmem:[%s2539_s15 + $0x30] sm:$0xff] }
  0x47   : > { %v256_v37 = vld [vmem:[%s2539_s15 + $0x230] sm:$0xff]  ;;  %v193_v38 = vld [vmem:[%s2539_s15 + $0x38] sm:$0xff]  ;;  %v194_v40 = vld [vmem:[%s2539_s15 + $0x40] sm:$0xff] }
  0x48   : > { %v257_v39 = vld [vmem:[%s2539_s15 + $0x238] sm:$0xff]  ;;  %v258_v41 = vld [vmem:[%s2539_s15 + $0x240] sm:$0xff]  ;;  %v195_v42 = vld [vmem:[%s2539_s15 + $0x48] sm:$0xff] }
  0x49   : > { %2187 = vmatpush3.bf16.msra.mxu0 %v2184_v8  ;;  %2218 = vmatpush3.bf16.msra.mxu1 %v2184_v8  ;;  %v259_v43 = vld [vmem:[%s2539_s15 + $0x248] sm:$0xff]  ;;  %v196_v44 = vld [vmem:[%s2539_s15 + $0x50] sm:$0xff]  ;;  %v197_v46 = vld [vmem:[%s2539_s15 + $0x58] sm:$0xff] }
  0x4a   : > { %2189 = vmatprep.subr.bf16.mxu0 %v2188_v12  ;;  %2211 = vmatprep.subr.bf16.mxu1 %v2188_v12  ;;  %v260_v45 = vld [vmem:[%s2539_s15 + $0x250] sm:$0xff]  ;;  %v261_v47 = vld [vmem:[%s2539_s15 + $0x258] sm:$0xff]  ;;  %v198_v48 = vld [vmem:[%s2539_s15 + $0x60] sm:$0xff] }
  0x4b   : > { %v262_v49 = vld [vmem:[%s2539_s15 + $0x260] sm:$0xff]  ;;  %v199_v50 = vld [vmem:[%s2539_s15 + $0x68] sm:$0xff]  ;;  %v200_v52 = vld [vmem:[%s2539_s15 + $0x70] sm:$0xff] }
  0x4c   : > { %v263_v51 = vld [vmem:[%s2539_s15 + $0x268] sm:$0xff]  ;;  %v264_v53 = vld [vmem:[%s2539_s15 + $0x270] sm:$0xff]  ;;  %v201_v54 = vld [vmem:[%s2539_s15 + $0x78] sm:$0xff] }
  0x4d   : > { %2191 = vmatpush3.bf16.msra.mxu0 %v2188_v12  ;;  %2219 = vmatpush3.bf16.msra.mxu1 %v2188_v12  ;;  %v265_v55 = vld [vmem:[%s2539_s15 + $0x278] sm:$0xff]  ;;  %v202_v56 = vld [vmem:[%s2539_s15 + $0x80] sm:$0xff]  ;;  %v203_v58 = vld [vmem:[%s2539_s15 + $0x88] sm:$0xff] }
  0x4e   : > { %2193 = vmatprep.subr.bf16.mxu0 %v2192_v15  ;;  %2212 = vmatprep.subr.bf16.mxu1 %v2192_v15  ;;  %v266_v57 = vld [vmem:[%s2539_s15 + $0x280] sm:$0xff]  ;;  %v267_v59 = vld [vmem:[%s2539_s15 + $0x288] sm:$0xff]  ;;  %v204_v60 = vld [vmem:[%s2539_s15 + $0x90] sm:$0xff] }
  0x4f   : > { %v268_v61 = vld [vmem:[%s2539_s15 + $0x290] sm:$0xff]  ;;  %v205_v62 = vld [vmem:[%s2539_s15 + $0x98] sm:$0xff]  ;;  %v206_v0 = vld [vmem:[%s2539_s15 + $0xa0] sm:$0xff] }
  0x50   : > { %v269_v63 = vld [vmem:[%s2539_s15 + $0x298] sm:$0xff]  ;;  %v270_v1 = vld [vmem:[%s2539_s15 + $0x2a0] sm:$0xff]  ;;  %v207_v2 = vld [vmem:[%s2539_s15 + $0xa8] sm:$0xff] }
  0x51   : > { %2195 = vmatpush3.bf16.msra.mxu0 %v2192_v15  ;;  %2220 = vmatpush3.bf16.msra.mxu1 %v2192_v15  ;;  %v271_v3 = vld [vmem:[%s2539_s15 + $0x2a8] sm:$0xff]  ;;  %v208_v4 = vld [vmem:[%s2539_s15 + $0xb0] sm:$0xff]  ;;  %v209_v6 = vld [vmem:[%s2539_s15 + $0xb8] sm:$0xff] }
  0x52   : > { %2197 = vmatprep.subr.bf16.mxu0 %v2196_v18  ;;  %2213 = vmatprep.subr.bf16.mxu1 %v2196_v18  ;;  %v272_v5 = vld [vmem:[%s2539_s15 + $0x2b0] sm:$0xff]  ;;  %v273_v7 = vld [vmem:[%s2539_s15 + $0x2b8] sm:$0xff]  ;;  %v210_v8 = vld [vmem:[%s2539_s15 + $0xc0] sm:$0xff] }
  0x53   : > { %v274_v9 = vld [vmem:[%s2539_s15 + $0x2c0] sm:$0xff]  ;;  %v211_v10 = vld [vmem:[%s2539_s15 + $0xc8] sm:$0xff]  ;;  %v212_v12 = vld [vmem:[%s2539_s15 + $0xd0] sm:$0xff] }
  0x54   : > { %v275_v11 = vld [vmem:[%s2539_s15 + $0x2c8] sm:$0xff]  ;;  %v276_v13 = vld [vmem:[%s2539_s15 + $0x2d0] sm:$0xff]  ;;  %v213_v14 = vld [vmem:[%s2539_s15 + $0xd8] sm:$0xff] }
  0x55   : > { %2199 = vmatpush3.bf16.msra.mxu0 %v2196_v18  ;;  %2221 = vmatpush3.bf16.msra.mxu1 %v2196_v18  ;;  %v277_v15 = vld [vmem:[%s2539_s15 + $0x2d8] sm:$0xff]  ;;  %v214_v16 = vld [vmem:[%s2539_s15 + $0xe0] sm:$0xff]  ;;  %v215_v18 = vld [vmem:[%s2539_s15 + $0xe8] sm:$0xff] }
  0x56   : > { %2201 = vmatprep.subr.bf16.mxu0 %v2200_v21  ;;  %2214 = vmatprep.subr.bf16.mxu1 %v2200_v21  ;;  %v278_v17 = vld [vmem:[%s2539_s15 + $0x2e0] sm:$0xff]  ;;  %v279_v19 = vld [vmem:[%s2539_s15 + $0x2e8] sm:$0xff]  ;;  %v216_v20 = vld [vmem:[%s2539_s15 + $0xf0] sm:$0xff] }
  0x57   : > { %v217_v22 = vld [vmem:[%s2539_s15 + $0xf8] sm:$0xff]  ;;  %v282_v25 = vld [vmem:[%s2539_s15 + $0x300] sm:$0xff] }
  0x58   : > { %v281_v23 = vld [vmem:[%s2539_s15 + $0x2f8] sm:$0xff] }
  0x59   : > { %2203 = vmatpush3.bf16.msra.mxu0 %v2200_v21  ;;  %2222 = vmatpush3.bf16.msra.mxu1 %v2200_v21  ;;  %v280_v21 = vld [vmem:[%s2539_s15 + $0x2f0] sm:$0xff] }
  0x5a   : > { %2205 = vmatprep.subr.bf16.mxu0 %v2204_v24  ;;  %2215 = vmatprep.subr.bf16.mxu1 %v2204_v24 }
  0x5d   : > { %2207 = vmatpush3.bf16.msra.mxu0 %v2204_v24  ;;  %2223 = vmatpush3.bf16.msra.mxu1 %v2204_v24  ;;  %v218_v24 = vld [vmem:[%s2539_s15 + $0x100] sm:$0xff] }
  0x60   : > { %1985 = vmatmul.mubr.f32.vlgmr.msra.gmra.mrb[0].mxu0 %v187_v26  ;;  %2081 = vmatmul.mubr.f32.vlgmr.msra.gmra.mrb[0].mxu1 %v251_v27  ;;  %v219_v26 = vld [vmem:[%s2539_s15 + $0x108] sm:$0xff] }
  0x61   : > { %1987 = vmatprep.mubr.f32.mxu0 %v188_v28  ;;  %2083 = vmatprep.mubr.f32.mxu1 %v252_v29  ;;  %v283_v27 = vld [vmem:[%s2539_s15 + $0x308] sm:$0xff]  ;;  %v220_v28 = vld [vmem:[%s2539_s15 + $0x110] sm:$0xff] }
  0x62   : > { %v284_v29 = vld [vmem:[%s2539_s15 + $0x310] sm:$0xff] }
  0x64   : > { %1988 = vmatmul.mubr.f32.gmra.mrb[2].mxu0 %v189_v30  ;;  %2084 = vmatmul.mubr.f32.gmra.mrb[2].mxu1 %v253_v31  ;;  %v221_v30 = vld [vmem:[%s2539_s15 + $0x118] sm:$0xff] }
  0x65   : > { %1990 = vmatprep.mubr.f32.mxu0 %v190_v32  ;;  %2086 = vmatprep.mubr.f32.mxu1 %v254_v33  ;;  %v285_v31 = vld [vmem:[%s2539_s15 + $0x318] sm:$0xff]  ;;  %v222_v32 = vld [vmem:[%s2539_s15 + $0x120] sm:$0xff] }
  0x66   : > { %v286_v33 = vld [vmem:[%s2539_s15 + $0x320] sm:$0xff] }
  0x68   : > { %1991 = vmatmul.mubr.f32.gmra.mrb[4].mxu0 %v191_v34  ;;  %2087 = vmatmul.mubr.f32.gmra.mrb[4].mxu1 %v255_v35  ;;  %v223_v34 = vld [vmem:[%s2539_s15 + $0x128] sm:$0xff] }
  0x69   : > { %1993 = vmatprep.mubr.f32.mxu0 %v192_v36  ;;  %2089 = vmatprep.mubr.f32.mxu1 %v256_v37  ;;  %v287_v35 = vld [vmem:[%s2539_s15 + $0x328] sm:$0xff]  ;;  %v224_v36 = vld [vmem:[%s2539_s15 + $0x130] sm:$0xff] }
  0x6a   : > { %v288_v37 = vld [vmem:[%s2539_s15 + $0x330] sm:$0xff] }
  0x6c   : > { %1994 = vmatmul.mubr.f32.gmra.mrb[6].mxu0 %v193_v38  ;;  %2090 = vmatmul.mubr.f32.gmra.mrb[6].mxu1 %v257_v39  ;;  %v225_v38 = vld [vmem:[%s2539_s15 + $0x138] sm:$0xff] }
  0x6d   : > { %1996 = vmatprep.mubr.f32.mxu0 %v194_v40  ;;  %2092 = vmatprep.mubr.f32.mxu1 %v258_v41  ;;  %v289_v39 = vld [vmem:[%s2539_s15 + $0x338] sm:$0xff]  ;;  %v226_v40 = vld [vmem:[%s2539_s15 + $0x140] sm:$0xff] }
  0x6e   : > { %v290_v41 = vld [vmem:[%s2539_s15 + $0x340] sm:$0xff] }
  0x70   : > { %1997 = vmatmul.mubr.f32.gmra.mrb[8].mxu0 %v195_v42  ;;  %2093 = vmatmul.mubr.f32.gmra.mrb[8].mxu1 %v259_v43  ;;  %v227_v42 = vld [vmem:[%s2539_s15 + $0x148] sm:$0xff] }
  0x71   : > { %1999 = vmatprep.mubr.f32.mxu0 %v196_v44  ;;  %2095 = vmatprep.mubr.f32.mxu1 %v260_v45  ;;  %v291_v43 = vld [vmem:[%s2539_s15 + $0x348] sm:$0xff]  ;;  %v228_v44 = vld [vmem:[%s2539_s15 + $0x150] sm:$0xff] }
  0x72   : > { %v292_v45 = vld [vmem:[%s2539_s15 + $0x350] sm:$0xff] }
  0x74   : > { %2000 = vmatmul.mubr.f32.gmra.mrb[10].mxu0 %v197_v46  ;;  %2096 = vmatmul.mubr.f32.gmra.mrb[10].mxu1 %v261_v47  ;;  %v229_v46 = vld [vmem:[%s2539_s15 + $0x158] sm:$0xff]  ;;  %v230_v47 = vld [vmem:[%s2539_s15 + $0x160] sm:$0xff] }
  0x75   : > { %2002 = vmatprep.mubr.f32.mxu0 %v198_v48  ;;  %2098 = vmatprep.mubr.f32.mxu1 %v262_v49  ;;  %v293_v48 = vld [vmem:[%s2539_s15 + $0x358] sm:$0xff]  ;;  %v231_v49 = vld [vmem:[%s2539_s15 + $0x168] sm:$0xff] }
  0x78   : > { %2003 = vmatmul.mubr.f32.gmra.mrb[12].mxu0 %v199_v50  ;;  %2099 = vmatmul.mubr.f32.gmra.mrb[12].mxu1 %v263_v51  ;;  %v294_v50 = vld [vmem:[%s2539_s15 + $0x360] sm:$0xff]  ;;  %v232_v51 = vld [vmem:[%s2539_s15 + $0x170] sm:$0xff] }
  0x79   : > { %2005 = vmatprep.mubr.f32.mxu0 %v200_v52  ;;  %2101 = vmatprep.mubr.f32.mxu1 %v264_v53  ;;  %v295_v52 = vld [vmem:[%s2539_s15 + $0x368] sm:$0xff]  ;;  %v233_v53 = vld [vmem:[%s2539_s15 + $0x178] sm:$0xff] }
  0x7c   : > { %2006 = vmatmul.mubr.f32.gmra.mrb[14].mxu0 %v201_v54  ;;  %2102 = vmatmul.mubr.f32.gmra.mrb[14].mxu1 %v265_v55  ;;  %v296_v54 = vld [vmem:[%s2539_s15 + $0x370] sm:$0xff]  ;;  %v234_v55 = vld [vmem:[%s2539_s15 + $0x180] sm:$0xff] }
  0x7d   : > { %2008 = vmatprep.mubr.f32.mxu0 %v202_v56  ;;  %2104 = vmatprep.mubr.f32.mxu1 %v266_v57  ;;  %v297_v56 = vld [vmem:[%s2539_s15 + $0x378] sm:$0xff]  ;;  %v235_v57 = vld [vmem:[%s2539_s15 + $0x188] sm:$0xff] }
  0x80   : > { %2009 = vmatmul.mubr.f32.gmra.mrb[16].mxu0 %v203_v58  ;;  %2105 = vmatmul.mubr.f32.gmra.mrb[16].mxu1 %v267_v59  ;;  %v298_v58 = vld [vmem:[%s2539_s15 + $0x380] sm:$0xff]  ;;  %v236_v59 = vld [vmem:[%s2539_s15 + $0x190] sm:$0xff] }
  0x81   : > { %2011 = vmatprep.mubr.f32.mxu0 %v204_v60  ;;  %2107 = vmatprep.mubr.f32.mxu1 %v268_v61  ;;  %v299_v60 = vld [vmem:[%s2539_s15 + $0x388] sm:$0xff]  ;;  %v237_v61 = vld [vmem:[%s2539_s15 + $0x198] sm:$0xff] }
  0x84   : > { %2012 = vmatmul.mubr.f32.gmra.mrb[18].mxu0 %v205_v62  ;;  %2108 = vmatmul.mubr.f32.gmra.mrb[18].mxu1 %v269_v63  ;;  %v300_v62 = vld [vmem:[%s2539_s15 + $0x390] sm:$0xff]  ;;  %v238_v63 = vld [vmem:[%s2539_s15 + $0x1a0] sm:$0xff] }
  0x85   : > { %2014 = vmatprep.mubr.f32.mxu0 %v206_v0  ;;  %2110 = vmatprep.mubr.f32.mxu1 %v270_v1  ;;  %v301_v0 = vld [vmem:[%s2539_s15 + $0x398] sm:$0xff]  ;;  %v239_v1 = vld [vmem:[%s2539_s15 + $0x1a8] sm:$0xff] }
  0x88   : > { %2015 = vmatmul.mubr.f32.gmra.mrb[20].mxu0 %v207_v2  ;;  %2111 = vmatmul.mubr.f32.gmra.mrb[20].mxu1 %v271_v3  ;;  %v302_v2 = vld [vmem:[%s2539_s15 + $0x3a0] sm:$0xff]  ;;  %v240_v3 = vld [vmem:[%s2539_s15 + $0x1b0] sm:$0xff] }
  0x89   : > { %2017 = vmatprep.mubr.f32.mxu0 %v208_v4  ;;  %2113 = vmatprep.mubr.f32.mxu1 %v272_v5  ;;  %v303_v4 = vld [vmem:[%s2539_s15 + $0x3a8] sm:$0xff]  ;;  %v241_v5 = vld [vmem:[%s2539_s15 + $0x1b8] sm:$0xff] }
  0x8c   : > { %2018 = vmatmul.mubr.f32.gmra.mrb[22].mxu0 %v209_v6  ;;  %2114 = vmatmul.mubr.f32.gmra.mrb[22].mxu1 %v273_v7  ;;  %v304_v6 = vld [vmem:[%s2539_s15 + $0x3b0] sm:$0xff]  ;;  %v242_v7 = vld [vmem:[%s2539_s15 + $0x1c0] sm:$0xff] }
  0x8d   : > { %2020 = vmatprep.mubr.f32.mxu0 %v210_v8  ;;  %2116 = vmatprep.mubr.f32.mxu1 %v274_v9  ;;  %v305_v8 = vld [vmem:[%s2539_s15 + $0x3b8] sm:$0xff]  ;;  %v243_v9 = vld [vmem:[%s2539_s15 + $0x1c8] sm:$0xff] }
  0x90   : > { %2021 = vmatmul.mubr.f32.gmra.mrb[24].mxu0 %v211_v10  ;;  %2117 = vmatmul.mubr.f32.gmra.mrb[24].mxu1 %v275_v11  ;;  %v306_v10 = vld [vmem:[%s2539_s15 + $0x3c0] sm:$0xff]  ;;  %v244_v11 = vld [vmem:[%s2539_s15 + $0x1d0] sm:$0xff] }
  0x91   : > { %2023 = vmatprep.mubr.f32.mxu0 %v212_v12  ;;  %2119 = vmatprep.mubr.f32.mxu1 %v276_v13  ;;  %v307_v12 = vld [vmem:[%s2539_s15 + $0x3c8] sm:$0xff]  ;;  %v245_v13 = vld [vmem:[%s2539_s15 + $0x1d8] sm:$0xff] }
  0x94   : > { %2024 = vmatmul.mubr.f32.gmra.mrb[26].mxu0 %v213_v14  ;;  %2120 = vmatmul.mubr.f32.gmra.mrb[26].mxu1 %v277_v15  ;;  %v308_v14 = vld [vmem:[%s2539_s15 + $0x3d0] sm:$0xff]  ;;  %v246_v15 = vld [vmem:[%s2539_s15 + $0x1e0] sm:$0xff] }
  0x95   : > { %2026 = vmatprep.mubr.f32.mxu0 %v214_v16  ;;  %2122 = vmatprep.mubr.f32.mxu1 %v278_v17  ;;  %v309_v16 = vld [vmem:[%s2539_s15 + $0x3d8] sm:$0xff]  ;;  %v247_v17 = vld [vmem:[%s2539_s15 + $0x1e8] sm:$0xff] }
  0x98   : > { %2027 = vmatmul.mubr.f32.gmra.mrb[28].mxu0 %v215_v18  ;;  %2123 = vmatmul.mubr.f32.gmra.mrb[28].mxu1 %v279_v19  ;;  %v310_v18 = vld [vmem:[%s2539_s15 + $0x3e0] sm:$0xff]  ;;  %v248_v19 = vld [vmem:[%s2539_s15 + $0x1f0] sm:$0xff] }
  0x99   : > { %2029 = vmatprep.mubr.f32.mxu0 %v216_v20  ;;  %2125 = vmatprep.mubr.f32.mxu1 %v280_v21  ;;  %v311_v20 = vld [vmem:[%s2539_s15 + $0x3e8] sm:$0xff]  ;;  %v249_v21 = vld [vmem:[%s2539_s15 + $0x1f8] sm:$0xff] }
  0x9c   : > { %2030 = vmatmul.mubr.f32.gmra.mrb[30].mxu0 %v217_v22  ;;  %2126 = vmatmul.mubr.f32.gmra.mrb[30].mxu1 %v281_v23  ;;  %v312_v22 = vld [vmem:[%s2539_s15 + $0x3f0] sm:$0xff]  ;;  %v313_v23 = vld [vmem:[%s2539_s15 + $0x3f8] sm:$0xff]  ;;  %s1802_s15 = sshll.u32 %s2535_s3, 1 }
  0x9d   : > { %2032 = vmatprep.mubr.f32.mxu0 %v218_v24  ;;  %2128 = vmatprep.mubr.f32.mxu1 %v282_v25  ;;  %s176_s4 = scalar_lea.vmem [#allocation7], %s1802_s15 }
  0x9e   : > { %s1714_s5 = sshll.u32 %s176_s4, 4  ;;  %s3309_s5 = int_to_ptr.vmem [resolvable:$true] %s1714_s5 }
  0x9f   : > { %s2319_s12 = scalar_lea.vmem %s3309_s5, 32  ;;  %p2326_p6 = scmp.lt.s32.totalorder %s3309_s5, %s2324_s21 }
  0xa0   : > { %2033 = vmatmul.mubr.f32.gmra.mrb[32].mxu0 %v219_v26  ;;  %2129 = vmatmul.mubr.f32.gmra.mrb[32].mxu1 %v283_v27  ;;  %p2320_p8 = scmp.ne.s32.totalorder %s3309_s5, %s2319_s12  ;;  %p2327_p13 = scmp.lt.s32.totalorder %s2325_s25, %s2319_s12 }
  0xa1   : > { %2035 = vmatprep.mubr.f32.mxu0 %v220_v28  ;;  %2131 = vmatprep.mubr.f32.mxu1 %v284_v29 }
  0xa2   : > { %p2321_p11 = pnand %p2320_p8, %p3421_p9  ;;  %p2328_p2 = por %p2327_p13, %p2326_p6 }
  0xa4   : > { %2036 = vmatmul.mubr.f32.gmra.mrb[34].mxu0 %v221_v30  ;;  %2132 = vmatmul.mubr.f32.gmra.mrb[34].mxu1 %v285_v31  ;;  %p2322_p0 = pneg %p2321_p11 }
  0xa5   : > { %2038 = vmatprep.mubr.f32.mxu0 %v222_v32  ;;  %2134 = vmatprep.mubr.f32.mxu1 %v286_v33 }
  0xa6   : > { %p2329_p5 = pnand %p2328_p2, %p2322_p0 }
  0xa8   : > { %2039 = vmatmul.mubr.f32.gmra.mrb[36].mxu0 %v223_v34  ;;  %2135 = vmatmul.mubr.f32.gmra.mrb[36].mxu1 %v287_v35 }
  0xa9   : > { %2041 = vmatprep.mubr.f32.mxu0 %v224_v36  ;;  %2137 = vmatprep.mubr.f32.mxu1 %v288_v37 }
  0xac   : > { %2042 = vmatmul.mubr.f32.gmra.mrb[38].mxu0 %v225_v38  ;;  %2138 = vmatmul.mubr.f32.gmra.mrb[38].mxu1 %v289_v39 }
  0xad   : > { %2044 = vmatprep.mubr.f32.mxu0 %v226_v40  ;;  %2140 = vmatprep.mubr.f32.mxu1 %v290_v41 }
  0xb0   : > { %2045 = vmatmul.mubr.f32.gmra.mrb[40].mxu0 %v227_v42  ;;  %2141 = vmatmul.mubr.f32.gmra.mrb[40].mxu1 %v291_v43 }
  0xb1   : > { %2047 = vmatprep.mubr.f32.mxu0 %v228_v44  ;;  %2143 = vmatprep.mubr.f32.mxu1 %v292_v45 }
  0xb4   : > { %2048 = vmatmul.mubr.f32.gmra.mrb[42].mxu0 %v229_v46  ;;  %2144 = vmatmul.mubr.f32.gmra.mrb[42].mxu1 %v293_v48 }
  0xb5   : > { %2050 = vmatprep.mubr.f32.mxu0 %v230_v47  ;;  %2146 = vmatprep.mubr.f32.mxu1 %v294_v50 }
  0xb8   : > { %2051 = vmatmul.mubr.f32.gmra.mrb[44].mxu0 %v231_v49  ;;  %2147 = vmatmul.mubr.f32.gmra.mrb[44].mxu1 %v295_v52 }
  0xb9   : > { %2053 = vmatprep.mubr.f32.mxu0 %v232_v51  ;;  %2149 = vmatprep.mubr.f32.mxu1 %v296_v54 }
  0xbc   : > { %2054 = vmatmul.mubr.f32.gmra.mrb[46].mxu0 %v233_v53  ;;  %2150 = vmatmul.mubr.f32.gmra.mrb[46].mxu1 %v297_v56 }
  0xbd   : > { %2056 = vmatprep.mubr.f32.mxu0 %v234_v55  ;;  %2152 = vmatprep.mubr.f32.mxu1 %v298_v58 }
  0xc0   : > { %2057 = vmatmul.mubr.f32.gmra.mrb[48].mxu0 %v235_v57  ;;  %2153 = vmatmul.mubr.f32.gmra.mrb[48].mxu1 %v299_v60 }
  0xc1   : > { %2059 = vmatprep.mubr.f32.mxu0 %v236_v59  ;;  %2155 = vmatprep.mubr.f32.mxu1 %v300_v62 }
  0xc4   : > { %2060 = vmatmul.mubr.f32.gmra.mrb[50].mxu0 %v237_v61  ;;  %2156 = vmatmul.mubr.f32.gmra.mrb[50].mxu1 %v301_v0 }
  0xc5   : > { %2062 = vmatprep.mubr.f32.mxu0 %v238_v63  ;;  %2158 = vmatprep.mubr.f32.mxu1 %v302_v2 }
  0xc8   : > { %2063 = vmatmul.mubr.f32.gmra.mrb[52].mxu0 %v239_v1  ;;  %2159 = vmatmul.mubr.f32.gmra.mrb[52].mxu1 %v303_v4 }
  0xc9   : > { %2065 = vmatprep.mubr.f32.mxu0 %v240_v3  ;;  %2161 = vmatprep.mubr.f32.mxu1 %v304_v6 }
  0xcc   : > { %2066 = vmatmul.mubr.f32.gmra.mrb[54].mxu0 %v241_v5  ;;  %2162 = vmatmul.mubr.f32.gmra.mrb[54].mxu1 %v305_v8 }
  0xcd   : > { %2068 = vmatprep.mubr.f32.mxu0 %v242_v7  ;;  %2164 = vmatprep.mubr.f32.mxu1 %v306_v10 }
  0xd0   : > { %2069 = vmatmul.mubr.f32.gmra.mrb[56].mxu0 %v243_v9  ;;  %2165 = vmatmul.mubr.f32.gmra.mrb[56].mxu1 %v307_v12 }
  0xd1   : > { %2071 = vmatprep.mubr.f32.mxu0 %v244_v11  ;;  %2167 = vmatprep.mubr.f32.mxu1 %v308_v14 }
  0xd4   : > { %2072 = vmatmul.mubr.f32.gmra.mrb[58].mxu0 %v245_v13  ;;  %2168 = vmatmul.mubr.f32.gmra.mrb[58].mxu1 %v309_v16 }
  0xd5   : > { %2074 = vmatprep.mubr.f32.mxu0 %v246_v15  ;;  %2170 = vmatprep.mubr.f32.mxu1 %v310_v18 }
  0xd8   : > { %2075 = vmatmul.mubr.f32.gmra.mrb[60].mxu0 %v247_v17  ;;  %2171 = vmatmul.mubr.f32.gmra.mrb[60].mxu1 %v311_v20 }
  0xd9   : > { %2077 = vmatprep.mubr.f32.mxu0 %v248_v19  ;;  %2173 = vmatprep.mubr.f32.mxu1 %v312_v22 }
  0xdc   : > { %2078 = vmatmul.mubr.f32.gmra.mrb[62].mxu0 %v249_v21  ;;  %2174 = vmatmul.mubr.f32.gmra.mrb[62].mxu1 %v313_v23 }
 0x133   : > { %v1986_v24 = vpop.f32.mrb[0].mxu0  ;;  %v2721_v25 = vpop.f32.mrb[0].mxu1 }
 0x134   : > { %v1038_v26 = vsel %vm1036_vm0, %v1986_v24, 0.0  ;;  %v1303_v27 = vmul.f32 %v1986_v24, %v1986_v24  ;;  %v396_v28 = vpop.f32.mrb[1].mxu0  ;;  %v2724_v29 = vpop.f32.mrb[1].mxu1 }
 0x135   : > { %v1037_v30 = vsel %vm1036_vm0, %v396_v28, 0.0  ;;  %v1302_v31 = vmul.f32 %v396_v28, %v396_v28 }
 0x136   : > { %v1431_v32 = vsel %vm1036_vm0, %v1303_v27, 0.0  ;;  %v1039_v33 = vadd.f32 %v1038_v26, %v1037_v30 }
 0x137   : > { %v1430_v34 = vsel %vm1036_vm0, %v1302_v31, 0.0  ;;  %v1989_v35 = vpop.f32.mrb[2].mxu0  ;;  %v2729_v36 = vpop.f32.mrb[2].mxu1 }
 0x138   : > { %v1432_v37 = vadd.f32 %v1431_v32, %v1430_v34  ;;  %v406_v38 = vpop.f32.mrb[3].mxu0  ;;  %v2731_v39 = vpop.f32.mrb[3].mxu1  ;;  %v1305_v40 = vmul.f32 %v1989_v35, %v1989_v35  ;;  %v1042_v44 = vsel %vm1036_vm0, %v1989_v35, 0.0 }
 0x139   : > { %v1040_v41 = vsel %vm1036_vm0, %v406_v38, 0.0  ;;  %v1304_v42 = vmul.f32 %v406_v38, %v406_v38 }
 0x13a   : > { %v1041_v43 = vadd.f32 %v1040_v41, %v1039_v33  ;;  %v1435_v52 = vsel %vm1036_vm0, %v1305_v40, 0.0 }
 0x13b   : > { %v1433_v45 = vsel %vm1036_vm0, %v1304_v42, 0.0  ;;  %v1992_v46 = vpop.f32.mrb[4].mxu0  ;;  %v2736_v47 = vpop.f32.mrb[4].mxu1 }
 0x13c   : > { %v1043_v48 = vadd.f32 %v1042_v44, %v1041_v43  ;;  %v1434_v49 = vadd.f32 %v1433_v45, %v1432_v37  ;;  %v416_v50 = vpop.f32.mrb[5].mxu0  ;;  %v2738_v51 = vpop.f32.mrb[5].mxu1  ;;  %v1307_v53 = vmul.f32 %v1992_v46, %v1992_v46  ;;  %v1046_v58 = vsel %vm1036_vm0, %v1992_v46, 0.0 }
 0x13d   : > { %v1044_v54 = vsel %vm1036_vm0, %v416_v50, 0.0  ;;  %v1306_v55 = vmul.f32 %v416_v50, %v416_v50 }
 0x13e   : > { %v1436_v56 = vadd.f32 %v1435_v52, %v1434_v49  ;;  %v1045_v57 = vadd.f32 %v1044_v54, %v1043_v48  ;;  %v1439_v2 = vsel %vm1036_vm0, %v1307_v53, 0.0 }
 0x13f   : > { %v1437_v59 = vsel %vm1036_vm0, %v1306_v55, 0.0  ;;  %v1995_v60 = vpop.f32.mrb[6].mxu0  ;;  %v2744_v61 = vpop.f32.mrb[6].mxu1 }
 0x140   : > { %v1047_v62 = vadd.f32 %v1046_v58, %v1045_v57  ;;  %v1438_v63 = vadd.f32 %v1437_v59, %v1436_v56  ;;  %v426_v0 = vpop.f32.mrb[7].mxu0  ;;  %v2746_v1 = vpop.f32.mrb[7].mxu1  ;;  %v1309_v3 = vmul.f32 %v1995_v60, %v1995_v60  ;;  %v1050_v8 = vsel %vm1036_vm0, %v1995_v60, 0.0 }
 0x141   : > { %v1048_v4 = vsel %vm1036_vm0, %v426_v0, 0.0  ;;  %v1308_v5 = vmul.f32 %v426_v0, %v426_v0 }
 0x142   : > { %v1440_v6 = vadd.f32 %v1439_v2, %v1438_v63  ;;  %v1049_v7 = vadd.f32 %v1048_v4, %v1047_v62  ;;  %v1443_v16 = vsel %vm1036_vm0, %v1309_v3, 0.0 }
 0x143   : > { %v1441_v9 = vsel %vm1036_vm0, %v1308_v5, 0.0  ;;  %v1998_v10 = vpop.f32.mrb[8].mxu0  ;;  %v2752_v11 = vpop.f32.mrb[8].mxu1 }
 0x144   : > { %v1442_v12 = vadd.f32 %v1441_v9, %v1440_v6  ;;  %v436_v13 = vpop.f32.mrb[9].mxu0  ;;  %v1051_v14 = vadd.f32 %v1050_v8, %v1049_v7  ;;  %v2754_v15 = vpop.f32.mrb[9].mxu1  ;;  %v1311_v17 = vmul.f32 %v1998_v10, %v1998_v10  ;;  %v1054_v22 = vsel %vm1036_vm0, %v1998_v10, 0.0 }
 0x145   : > { %v1052_v18 = vsel %vm1036_vm0, %v436_v13, 0.0  ;;  %v1310_v19 = vmul.f32 %v436_v13, %v436_v13 }
 0x146   : > { %v1053_v20 = vadd.f32 %v1052_v18, %v1051_v14  ;;  %v1444_v21 = vadd.f32 %v1443_v16, %v1442_v12  ;;  %v1447_v32 = vsel %vm1036_vm0, %v1311_v17, 0.0 }
 0x147   : > { %v1445_v23 = vsel %vm1036_vm0, %v1310_v19, 0.0  ;;  %v2001_v24 = vpop.f32.mrb[10].mxu0  ;;  %v2760_v26 = vpop.f32.mrb[10].mxu1 }
 0x148   : > { %v1446_v27 = vadd.f32 %v1445_v23, %v1444_v21  ;;  %v446_v28 = vpop.f32.mrb[11].mxu0  ;;  %v1055_v30 = vadd.f32 %v1054_v22, %v1053_v20  ;;  %v2762_v31 = vpop.f32.mrb[11].mxu1  ;;  %v1313_v33 = vmul.f32 %v2001_v24, %v2001_v24  ;;  %v1058_v40 = vsel %vm1036_vm0, %v2001_v24, 0.0 }
 0x149   : > { %v1056_v34 = vsel %vm1036_vm0, %v446_v28, 0.0  ;;  %v1312_v35 = vmul.f32 %v446_v28, %v446_v28 }
 0x14a   : > { %v1057_v37 = vadd.f32 %v1056_v34, %v1055_v30  ;;  %v1448_v38 = vadd.f32 %v1447_v32, %v1446_v27  ;;  %v1451_v49 = vsel %vm1036_vm0, %v1313_v33, 0.0 }
 0x14b   : > { %v1449_v41 = vsel %vm1036_vm0, %v1312_v35, 0.0  ;;  %v2004_v42 = vpop.f32.mrb[12].mxu0  ;;  %v2768_v43 = vpop.f32.mrb[12].mxu1 }
 0x14c   : > { %v1450_v44 = vadd.f32 %v1449_v41, %v1448_v38  ;;  %v456_v45 = vpop.f32.mrb[13].mxu0  ;;  %v1059_v46 = vadd.f32 %v1058_v40, %v1057_v37  ;;  %v2770_v48 = vpop.f32.mrb[13].mxu1  ;;  %v1315_v50 = vmul.f32 %v2004_v42, %v2004_v42  ;;  %v1062_v56 = vsel %vm1036_vm0, %v2004_v42, 0.0 }
 0x14d   : > { %v1060_v52 = vsel %vm1036_vm0, %v456_v45, 0.0  ;;  %v1314_v53 = vmul.f32 %v456_v45, %v456_v45 }
 0x14e   : > { %v1061_v54 = vadd.f32 %v1060_v52, %v1059_v46  ;;  %v1452_v55 = vadd.f32 %v1451_v49, %v1450_v44  ;;  %v1455_v2 = vsel %vm1036_vm0, %v1315_v50, 0.0 }
 0x14f   : > { %v1453_v57 = vsel %vm1036_vm0, %v1314_v53, 0.0  ;;  %v2007_v58 = vpop.f32.mrb[14].mxu0  ;;  %v2776_v59 = vpop.f32.mrb[14].mxu1 }
 0x150   : > { %v1454_v60 = vadd.f32 %v1453_v57, %v1452_v55  ;;  %v466_v62 = vpop.f32.mrb[15].mxu0  ;;  %v1063_v63 = vadd.f32 %v1062_v56, %v1061_v54  ;;  %v2778_v0 = vpop.f32.mrb[15].mxu1  ;;  %v1317_v3 = vmul.f32 %v2007_v58, %v2007_v58  ;;  %v1066_v8 = vsel %vm1036_vm0, %v2007_v58, 0.0 }
 0x151   : > { %v1064_v4 = vsel %vm1036_vm0, %v466_v62, 0.0  ;;  %v1316_v5 = vmul.f32 %v466_v62, %v466_v62 }
 0x152   : > { %v1065_v6 = vadd.f32 %v1064_v4, %v1063_v63  ;;  %v1456_v7 = vadd.f32 %v1455_v2, %v1454_v60  ;;  %v1459_v18 = vsel %vm1036_vm0, %v1317_v3, 0.0 }
 0x153   : > { %v1457_v9 = vsel %vm1036_vm0, %v1316_v5, 0.0  ;;  %v2010_v10 = vpop.f32.mrb[16].mxu0  ;;  %v2784_v12 = vpop.f32.mrb[16].mxu1 }
 0x154   : > { %v1458_v13 = vadd.f32 %v1457_v9, %v1456_v7  ;;  %v476_v14 = vpop.f32.mrb[17].mxu0  ;;  %v1067_v16 = vadd.f32 %v1066_v8, %v1065_v6  ;;  %v2786_v17 = vpop.f32.mrb[17].mxu1  ;;  %v1319_v19 = vmul.f32 %v2010_v10, %v2010_v10  ;;  %v1070_v24 = vsel %vm1036_vm0, %v2010_v10, 0.0 }
 0x155   : > { %v1068_v20 = vsel %vm1036_vm0, %v476_v14, 0.0  ;;  %v1318_v21 = vmul.f32 %v476_v14, %v476_v14 }
 0x156   : > { %v1069_v22 = vadd.f32 %v1068_v20, %v1067_v16  ;;  %v1460_v23 = vadd.f32 %v1459_v18, %v1458_v13  ;;  %v1463_v37 = vsel %vm1036_vm0, %v1319_v19, 0.0 }
 0x157   : > { %v1461_v27 = vsel %vm1036_vm0, %v1318_v21, 0.0  ;;  %v2013_v28 = vpop.f32.mrb[18].mxu0  ;;  %v2792_v30 = vpop.f32.mrb[18].mxu1 }
 0x158   : > { %v1462_v32 = vadd.f32 %v1461_v27, %v1460_v23  ;;  %v486_v33 = vpop.f32.mrb[19].mxu0  ;;  %v1071_v34 = vadd.f32 %v1070_v24, %v1069_v22  ;;  %v2794_v35 = vpop.f32.mrb[19].mxu1  ;;  %v1321_v38 = vmul.f32 %v2013_v28, %v2013_v28  ;;  %v1074_v45 = vsel %vm1036_vm0, %v2013_v28, 0.0 }
 0x159   : > { %v1072_v40 = vsel %vm1036_vm0, %v486_v33, 0.0  ;;  %v1320_v41 = vmul.f32 %v486_v33, %v486_v33 }
 0x15a   : > { %v1073_v42 = vadd.f32 %v1072_v40, %v1071_v34  ;;  %v1464_v44 = vadd.f32 %v1463_v37, %v1462_v32  ;;  %v1467_v56 = vsel %vm1036_vm0, %v1321_v38, 0.0 }
 0x15b   : > { %v1465_v46 = vsel %vm1036_vm0, %v1320_v41, 0.0  ;;  %v2016_v49 = vpop.f32.mrb[20].mxu0  ;;  %v2800_v50 = vpop.f32.mrb[20].mxu1 }
 0x15c   : > { %v1466_v52 = vadd.f32 %v1465_v46, %v1464_v44  ;;  %v496_v53 = vpop.f32.mrb[21].mxu0  ;;  %v1075_v54 = vadd.f32 %v1074_v45, %v1073_v42  ;;  %v2802_v55 = vpop.f32.mrb[21].mxu1  ;;  %v1323_v57 = vmul.f32 %v2016_v49, %v2016_v49  ;;  %v1078_v2 = vsel %vm1036_vm0, %v2016_v49, 0.0 }
 0x15d   : > { %v1076_v58 = vsel %vm1036_vm0, %v496_v53, 0.0  ;;  %v1322_v60 = vmul.f32 %v496_v53, %v496_v53 }
 0x15e   : > { %v1077_v62 = vadd.f32 %v1076_v58, %v1075_v54  ;;  %v1468_v63 = vadd.f32 %v1467_v56, %v1466_v52  ;;  %v1471_v10 = vsel %vm1036_vm0, %v1323_v57, 0.0 }
 0x15f   : > { %v1469_v3 = vsel %vm1036_vm0, %v1322_v60, 0.0  ;;  %v2019_v4 = vpop.f32.mrb[22].mxu0  ;;  %v2808_v5 = vpop.f32.mrb[22].mxu1 }
 0x160   : > { %v1470_v6 = vadd.f32 %v1469_v3, %v1468_v63  ;;  %v506_v7 = vpop.f32.mrb[23].mxu0  ;;  %v1079_v8 = vadd.f32 %v1078_v2, %v1077_v62  ;;  %v2810_v9 = vpop.f32.mrb[23].mxu1  ;;  %v1325_v13 = vmul.f32 %v2019_v4, %v2019_v4  ;;  %v1082_v20 = vsel %vm1036_vm0, %v2019_v4, 0.0 }
 0x161   : > { %v1080_v14 = vsel %vm1036_vm0, %v506_v7, 0.0  ;;  %v1324_v16 = vmul.f32 %v506_v7, %v506_v7 }
 0x162   : > { %v1081_v18 = vadd.f32 %v1080_v14, %v1079_v8  ;;  %v1472_v19 = vadd.f32 %v1471_v10, %v1470_v6  ;;  %v1475_v33 = vsel %vm1036_vm0, %v1325_v13, 0.0 }
 0x163   : > { %v1473_v21 = vsel %vm1036_vm0, %v1324_v16, 0.0  ;;  %v2022_v22 = vpop.f32.mrb[24].mxu0  ;;  %v2816_v23 = vpop.f32.mrb[24].mxu1 }
 0x164   : > { %v1474_v24 = vadd.f32 %v1473_v21, %v1472_v19  ;;  %v516_v27 = vpop.f32.mrb[25].mxu0  ;;  %v1083_v28 = vadd.f32 %v1082_v20, %v1081_v18  ;;  %v2818_v32 = vpop.f32.mrb[25].mxu1  ;;  %v1327_v34 = vmul.f32 %v2022_v22, %v2022_v22  ;;  %v1086_v42 = vsel %vm1036_vm0, %v2022_v22, 0.0 }
 0x165   : > { %v1084_v37 = vsel %vm1036_vm0, %v516_v27, 0.0  ;;  %v1326_v38 = vmul.f32 %v516_v27, %v516_v27 }
 0x166   : > { %v1085_v40 = vadd.f32 %v1084_v37, %v1083_v28  ;;  %v1476_v41 = vadd.f32 %v1475_v33, %v1474_v24  ;;  %v1479_v56 = vsel %vm1036_vm0, %v1327_v34, 0.0 }
 0x167   : > { %v1477_v44 = vsel %vm1036_vm0, %v1326_v38, 0.0  ;;  %v2025_v45 = vpop.f32.mrb[26].mxu0  ;;  %v2824_v46 = vpop.f32.mrb[26].mxu1 }
 0x168   : > { %v1478_v49 = vadd.f32 %v1477_v44, %v1476_v41  ;;  %v526_v52 = vpop.f32.mrb[27].mxu0  ;;  %v1087_v53 = vadd.f32 %v1086_v42, %v1085_v40  ;;  %v2826_v54 = vpop.f32.mrb[27].mxu1  ;;  %v1329_v57 = vmul.f32 %v2025_v45, %v2025_v45  ;;  %v1090_v2 = vsel %vm1036_vm0, %v2025_v45, 0.0 }
 0x169   : > { %v1088_v58 = vsel %vm1036_vm0, %v526_v52, 0.0  ;;  %v1328_v60 = vmul.f32 %v526_v52, %v526_v52 }
 0x16a   : > { %v1089_v62 = vadd.f32 %v1088_v58, %v1087_v53  ;;  %v1480_v63 = vadd.f32 %v1479_v56, %v1478_v49  ;;  %v1483_v14 = vsel %vm1036_vm0, %v1329_v57, 0.0 }
 0x16b   : > { %v1481_v3 = vsel %vm1036_vm0, %v1328_v60, 0.0  ;;  %v2028_v4 = vpop.f32.mrb[28].mxu0  ;;  %v2832_v6 = vpop.f32.mrb[28].mxu1 }
 0x16c   : > { %v1482_v7 = vadd.f32 %v1481_v3, %v1480_v63  ;;  %v536_v8 = vpop.f32.mrb[29].mxu0  ;;  %v1091_v10 = vadd.f32 %v1090_v2, %v1089_v62  ;;  %v2834_v13 = vpop.f32.mrb[29].mxu1  ;;  %v1331_v16 = vmul.f32 %v2028_v4, %v2028_v4  ;;  %v1094_v22 = vsel %vm1036_vm0, %v2028_v4, 0.0 }
 0x16d   : > { %v1092_v18 = vsel %vm1036_vm0, %v536_v8, 0.0  ;;  %v1330_v19 = vmul.f32 %v536_v8, %v536_v8 }
 0x16e   : > { %v1093_v20 = vadd.f32 %v1092_v18, %v1091_v10  ;;  %v1484_v21 = vadd.f32 %v1483_v14, %v1482_v7  ;;  %v1487_v40 = vsel %vm1036_vm0, %v1331_v16, 0.0 }
 0x16f   : > { %v1485_v24 = vsel %vm1036_vm0, %v1330_v19, 0.0  ;;  %v2031_v27 = vpop.f32.mrb[30].mxu0  ;;  %v2840_v28 = vpop.f32.mrb[30].mxu1 }
 0x170   : > { %v1486_v33 = vadd.f32 %v1485_v24, %v1484_v21  ;;  %v546_v34 = vpop.f32.mrb[31].mxu0  ;;  %v1095_v37 = vadd.f32 %v1094_v22, %v1093_v20  ;;  %v2842_v38 = vpop.f32.mrb[31].mxu1  ;;  %v1333_v41 = vmul.f32 %v2031_v27, %v2031_v27  ;;  %v1098_v52 = vsel %vm1036_vm0, %v2031_v27, 0.0 }
 0x171   : > { %v1096_v42 = vsel %vm1036_vm0, %v546_v34, 0.0  ;;  %v1332_v44 = vmul.f32 %v546_v34, %v546_v34 }
 0x172   : > { %v1097_v45 = vadd.f32 %v1096_v42, %v1095_v37  ;;  %v1488_v49 = vadd.f32 %v1487_v40, %v1486_v33  ;;  %v1491_v2 = vsel %vm1036_vm0, %v1333_v41, 0.0 }
 0x173   : > { %v1489_v53 = vsel %vm1036_vm0, %v1332_v44, 0.0  ;;  %v2034_v56 = vpop.f32.mrb[32].mxu0  ;;  %v2848_v57 = vpop.f32.mrb[32].mxu1 }
 0x174   : > { %v1490_v58 = vadd.f32 %v1489_v53, %v1488_v49  ;;  %v556_v60 = vpop.f32.mrb[33].mxu0  ;;  %v1099_v62 = vadd.f32 %v1098_v52, %v1097_v45  ;;  %v2850_v63 = vpop.f32.mrb[33].mxu1  ;;  %v1335_v3 = vmul.f32 %v2034_v56, %v2034_v56  ;;  %v1102_v14 = vsel %vm1036_vm0, %v2034_v56, 0.0 }
 0x175   : > { %v1100_v4 = vsel %vm1036_vm0, %v556_v60, 0.0  ;;  %v1334_v7 = vmul.f32 %v556_v60, %v556_v60 }
 0x176   : > { %v1101_v8 = vadd.f32 %v1100_v4, %v1099_v62  ;;  %v1492_v10 = vadd.f32 %v1491_v2, %v1490_v58  ;;  %v1495_v27 = vsel %vm1036_vm0, %v1335_v3, 0.0 }
 0x177   : > { %v1493_v16 = vsel %vm1036_vm0, %v1334_v7, 0.0  ;;  %v2037_v18 = vpop.f32.mrb[34].mxu0  ;;  %v2856_v19 = vpop.f32.mrb[34].mxu1 }
 0x178   : > { %v1494_v20 = vadd.f32 %v1493_v16, %v1492_v10  ;;  %v566_v21 = vpop.f32.mrb[35].mxu0  ;;  %v1103_v22 = vadd.f32 %v1102_v14, %v1101_v8  ;;  %v2858_v24 = vpop.f32.mrb[35].mxu1  ;;  %v1337_v33 = vmul.f32 %v2037_v18, %v2037_v18  ;;  %v1106_v42 = vsel %vm1036_vm0, %v2037_v18, 0.0 }
 0x179   : > { %v1104_v34 = vsel %vm1036_vm0, %v566_v21, 0.0  ;;  %v1336_v37 = vmul.f32 %v566_v21, %v566_v21 }
 0x17a   : > { %v1105_v40 = vadd.f32 %v1104_v34, %v1103_v22  ;;  %v1496_v41 = vadd.f32 %v1495_v27, %v1494_v20  ;;  %v1499_v60 = vsel %vm1036_vm0, %v1337_v33, 0.0 }
 0x17b   : > { %v1497_v44 = vsel %vm1036_vm0, %v1336_v37, 0.0  ;;  %v2040_v45 = vpop.f32.mrb[36].mxu0  ;;  %v2864_v49 = vpop.f32.mrb[36].mxu1 }
 0x17c   : > { %v1498_v52 = vadd.f32 %v1497_v44, %v1496_v41  ;;  %v576_v53 = vpop.f32.mrb[37].mxu0  ;;  %v1107_v56 = vadd.f32 %v1106_v42, %v1105_v40  ;;  %v2866_v58 = vpop.f32.mrb[37].mxu1  ;;  %v1339_v62 = vmul.f32 %v2040_v45, %v2040_v45  ;;  %v1110_v8 = vsel %vm1036_vm0, %v2040_v45, 0.0 }
 0x17d   : > { %v1108_v2 = vsel %vm1036_vm0, %v576_v53, 0.0  ;;  %v1338_v3 = vmul.f32 %v576_v53, %v576_v53 }
 0x17e   : > { %v1109_v4 = vadd.f32 %v1108_v2, %v1107_v56  ;;  %v1500_v7 = vadd.f32 %v1499_v60, %v1498_v52  ;;  %v1503_v27 = vsel %vm1036_vm0, %v1339_v62, 0.0 }
 0x17f   : > { %v1501_v10 = vsel %vm1036_vm0, %v1338_v3, 0.0  ;;  %v2043_v14 = vpop.f32.mrb[38].mxu0  ;;  %v2872_v16 = vpop.f32.mrb[38].mxu1 }
 0x180   : > { %v1502_v18 = vadd.f32 %v1501_v10, %v1500_v7  ;;  %v586_v20 = vpop.f32.mrb[39].mxu0  ;;  %v1111_v21 = vadd.f32 %v1110_v8, %v1109_v4  ;;  %v2874_v22 = vpop.f32.mrb[39].mxu1  ;;  %v1341_v33 = vmul.f32 %v2043_v14, %v2043_v14  ;;  %v1114_v42 = vsel %vm1036_vm0, %v2043_v14, 0.0 }
 0x181   : > { %v1112_v34 = vsel %vm1036_vm0, %v586_v20, 0.0  ;;  %v1340_v37 = vmul.f32 %v586_v20, %v586_v20 }
 0x182   : > { %v1113_v40 = vadd.f32 %v1112_v34, %v1111_v21  ;;  %v1504_v41 = vadd.f32 %v1503_v27, %v1502_v18  ;;  %v1507_v62 = vsel %vm1036_vm0, %v1341_v33, 0.0 }
 0x183   : > { %v1505_v44 = vsel %vm1036_vm0, %v1340_v37, 0.0  ;;  %v2046_v45 = vpop.f32.mrb[40].mxu0  ;;  %v2880_v52 = vpop.f32.mrb[40].mxu1 }
 0x184   : > { %v1506_v53 = vadd.f32 %v1505_v44, %v1504_v41  ;;  %v596_v56 = vpop.f32.mrb[41].mxu0  ;;  %v1115_v60 = vadd.f32 %v1114_v42, %v1113_v40  ;;  %v2882_v2 = vpop.f32.mrb[41].mxu1  ;;  %v1343_v3 = vmul.f32 %v2046_v45, %v2046_v45  ;;  %v1118_v14 = vsel %vm1036_vm0, %v2046_v45, 0.0 }
 0x185   : > { %v1116_v4 = vsel %vm1036_vm0, %v596_v56, 0.0  ;;  %v1342_v7 = vmul.f32 %v596_v56, %v596_v56 }
 0x186   : > { %v1117_v8 = vadd.f32 %v1116_v4, %v1115_v60  ;;  %v1508_v10 = vadd.f32 %v1507_v62, %v1506_v53  ;;  %v1511_v33 = vsel %vm1036_vm0, %v1343_v3, 0.0 }
 0x187   : > { %v1509_v18 = vsel %vm1036_vm0, %v1342_v7, 0.0  ;;  %v2049_v20 = vpop.f32.mrb[42].mxu0  ;;  %v2888_v21 = vpop.f32.mrb[42].mxu1 }
 0x188   : > { %3385 = vst [vmem:[#allocation10_spill] sm:$0xff] %v2888_v21  ;;  %v1510_v27 = vadd.f32 %v1509_v18, %v1508_v10  ;;  %v606_v34 = vpop.f32.mrb[43].mxu0  ;;  %v1119_v37 = vadd.f32 %v1118_v14, %v1117_v8  ;;  %v2890_v40 = vpop.f32.mrb[43].mxu1  ;;  %v1345_v41 = vmul.f32 %v2049_v20, %v2049_v20  ;;  %v1122_v45 = vsel %vm1036_vm0, %v2049_v20, 0.0 }
 0x189   : > { %v1120_v42 = vsel %vm1036_vm0, %v606_v34, 0.0  ;;  %v1344_v44 = vmul.f32 %v606_v34, %v606_v34 }
 0x18a   : > { %v1121_v56 = vadd.f32 %v1120_v42, %v1119_v37  ;;  %v1512_v53 = vadd.f32 %v1511_v33, %v1510_v27  ;;  %v1515_v3 = vsel %vm1036_vm0, %v1345_v41, 0.0 }
 0x18b   : > { %v1513_v60 = vsel %vm1036_vm0, %v1344_v44, 0.0  ;;  %v2052_v62 = vpop.f32.mrb[44].mxu0  ;;  %v2896_v4 = vpop.f32.mrb[44].mxu1 }
 0x18c   : > { %3386 = vst [vmem:[#allocation11_spill] sm:$0xff] %v2896_v4  ;;  %v1514_v7 = vadd.f32 %v1513_v60, %v1512_v53  ;;  %v616_v10 = vpop.f32.mrb[45].mxu0  ;;  %v1123_v8 = vadd.f32 %v1122_v45, %v1121_v56  ;;  %v2898_v14 = vpop.f32.mrb[45].mxu1  ;;  %v1347_v18 = vmul.f32 %v2052_v62, %v2052_v62  ;;  %v1126_v20 = vsel %vm1036_vm0, %v2052_v62, 0.0 }
 0x18d   : > { %3387 = vst [vmem:[#allocation12_spill] sm:$0xff] %v2898_v14  ;;  %v1124_v21 = vsel %vm1036_vm0, %v616_v10, 0.0  ;;  %v1346_v34 = vmul.f32 %v616_v10, %v616_v10 }
 0x18e   : > { %v1125_v37 = vadd.f32 %v1124_v21, %v1123_v8  ;;  %v1516_v27 = vadd.f32 %v1515_v3, %v1514_v7  ;;  %v1519_v41 = vsel %vm1036_vm0, %v1347_v18, 0.0 }
 0x18f   : > { %v1517_v33 = vsel %vm1036_vm0, %v1346_v34, 0.0  ;;  %v2055_v42 = vpop.f32.mrb[46].mxu0  ;;  %v2904_v44 = vpop.f32.mrb[46].mxu1 }
 0x190   : > { %3388 = vst [vmem:[#allocation13_spill] sm:$0xff] %v2904_v44  ;;  %v1518_v53 = vadd.f32 %v1517_v33, %v1516_v27  ;;  %v626_v60 = vpop.f32.mrb[47].mxu0  ;;  %v1127_v56 = vadd.f32 %v1126_v20, %v1125_v37  ;;  %v2906_v45 = vpop.f32.mrb[47].mxu1  ;;  %v1349_v4 = vmul.f32 %v2055_v42, %v2055_v42  ;;  %v1130_v62 = vsel %vm1036_vm0, %v2055_v42, 0.0 }
 0x191   : > { %3389 = vst [vmem:[#allocation14_spill] sm:$0xff] %v2906_v45  ;;  %v1128_v14 = vsel %vm1036_vm0, %v626_v60, 0.0  ;;  %v1348_v10 = vmul.f32 %v626_v60, %v626_v60 }
 0x192   : > { %v1129_v21 = vadd.f32 %v1128_v14, %v1127_v56  ;;  %v1520_v7 = vadd.f32 %v1519_v41, %v1518_v53  ;;  %v1523_v18 = vsel %vm1036_vm0, %v1349_v4, 0.0 }
 0x193   : > { %v1521_v8 = vsel %vm1036_vm0, %v1348_v10, 0.0  ;;  %v2058_v3 = vpop.f32.mrb[48].mxu0  ;;  %v2912_v34 = vpop.f32.mrb[48].mxu1 }
 0x194   : > { %3390 = vst [vmem:[#allocation15_spill] sm:$0xff] %v2912_v34  ;;  %v1522_v27 = vadd.f32 %v1521_v8, %v1520_v7  ;;  %v636_v33 = vpop.f32.mrb[49].mxu0  ;;  %v1131_v37 = vadd.f32 %v1130_v62, %v1129_v21  ;;  %v2914_v20 = vpop.f32.mrb[49].mxu1  ;;  %v1351_v44 = vmul.f32 %v2058_v3, %v2058_v3  ;;  %v1134_v42 = vsel %vm1036_vm0, %v2058_v3, 0.0 }
 0x195   : > { %3391 = vst [vmem:[#allocation16_spill] sm:$0xff] %v2914_v20  ;;  %v1132_v45 = vsel %vm1036_vm0, %v636_v33, 0.0  ;;  %v1350_v60 = vmul.f32 %v636_v33, %v636_v33 }
 0x196   : > { %v1133_v14 = vadd.f32 %v1132_v45, %v1131_v37  ;;  %v1524_v53 = vadd.f32 %v1523_v18, %v1522_v27  ;;  %v1527_v4 = vsel %vm1036_vm0, %v1351_v44, 0.0 }
 0x197   : > { %v1525_v56 = vsel %vm1036_vm0, %v1350_v60, 0.0  ;;  %v2061_v41 = vpop.f32.mrb[50].mxu0  ;;  %v2920_v10 = vpop.f32.mrb[50].mxu1 }
 0x198   : > { %3392 = vst [vmem:[#allocation17_spill] sm:$0xff] %v2920_v10  ;;  %v1526_v7 = vadd.f32 %v1525_v56, %v1524_v53  ;;  %v646_v8 = vpop.f32.mrb[51].mxu0  ;;  %v1135_v21 = vadd.f32 %v1134_v42, %v1133_v14  ;;  %v2922_v62 = vpop.f32.mrb[51].mxu1  ;;  %v1353_v34 = vmul.f32 %v2061_v41, %v2061_v41  ;;  %v1138_v3 = vsel %vm1036_vm0, %v2061_v41, 0.0 }
 0x199   : > { %3393 = vst [vmem:[#allocation18_spill] sm:$0xff] %v2922_v62  ;;  %v1136_v20 = vsel %vm1036_vm0, %v646_v8, 0.0  ;;  %v1352_v33 = vmul.f32 %v646_v8, %v646_v8 }
 0x19a   : > { %v1137_v45 = vadd.f32 %v1136_v20, %v1135_v21  ;;  %v1528_v27 = vadd.f32 %v1527_v4, %v1526_v7  ;;  %v1531_v44 = vsel %vm1036_vm0, %v1353_v34, 0.0 }
 0x19b   : > { %v1529_v37 = vsel %vm1036_vm0, %v1352_v33, 0.0  ;;  %v2064_v18 = vpop.f32.mrb[52].mxu0  ;;  %v2928_v60 = vpop.f32.mrb[52].mxu1 }
 0x19c   : > { %3394 = vst [vmem:[#allocation19_spill] sm:$0xff] %v2928_v60  ;;  %v1530_v53 = vadd.f32 %v1529_v37, %v1528_v27  ;;  %v656_v56 = vpop.f32.mrb[53].mxu0  ;;  %v1139_v14 = vadd.f32 %v1138_v3, %v1137_v45  ;;  %v2930_v42 = vpop.f32.mrb[53].mxu1  ;;  %v1355_v10 = vmul.f32 %v2064_v18, %v2064_v18  ;;  %v1142_v41 = vsel %vm1036_vm0, %v2064_v18, 0.0 }
 0x19d   : > { %3395 = vst [vmem:[#allocation20_spill] sm:$0xff] %v2930_v42  ;;  %v1140_v62 = vsel %vm1036_vm0, %v656_v56, 0.0  ;;  %v1354_v8 = vmul.f32 %v656_v56, %v656_v56 }
 0x19e   : > { %v1141_v20 = vadd.f32 %v1140_v62, %v1139_v14  ;;  %v1532_v7 = vadd.f32 %v1531_v44, %v1530_v53  ;;  %v1535_v34 = vsel %vm1036_vm0, %v1355_v10, 0.0 }
 0x19f   : > { %v1533_v21 = vsel %vm1036_vm0, %v1354_v8, 0.0  ;;  %v2067_v4 = vpop.f32.mrb[54].mxu0  ;;  %v2936_v33 = vpop.f32.mrb[54].mxu1 }
 0x1a0   : > { %3396 = vst [vmem:[#allocation21_spill] sm:$0xff] %v2936_v33  ;;  %v1534_v27 = vadd.f32 %v1533_v21, %v1532_v7  ;;  %v666_v37 = vpop.f32.mrb[55].mxu0  ;;  %v1143_v45 = vadd.f32 %v1142_v41, %v1141_v20  ;;  %v2938_v3 = vpop.f32.mrb[55].mxu1  ;;  %v1357_v60 = vmul.f32 %v2067_v4, %v2067_v4  ;;  %v1146_v18 = vsel %vm1036_vm0, %v2067_v4, 0.0 }
 0x1a1   : > { %3397 = vst [vmem:[#allocation22_spill] sm:$0xff] %v2938_v3  ;;  %v1144_v42 = vsel %vm1036_vm0, %v666_v37, 0.0  ;;  %v1356_v56 = vmul.f32 %v666_v37, %v666_v37 }
 0x1a2   : > { %v1145_v62 = vadd.f32 %v1144_v42, %v1143_v45  ;;  %v1536_v53 = vadd.f32 %v1535_v34, %v1534_v27  ;;  %v1539_v10 = vsel %vm1036_vm0, %v1357_v60, 0.0 }
 0x1a3   : > { %v1537_v14 = vsel %vm1036_vm0, %v1356_v56, 0.0  ;;  %v2070_v44 = vpop.f32.mrb[56].mxu0  ;;  %v2944_v8 = vpop.f32.mrb[56].mxu1 }
 0x1a4   : > { %3398 = vst [vmem:[#allocation23_spill] sm:$0xff] %v2944_v8  ;;  %v1538_v7 = vadd.f32 %v1537_v14, %v1536_v53  ;;  %v676_v21 = vpop.f32.mrb[57].mxu0  ;;  %v1147_v20 = vadd.f32 %v1146_v18, %v1145_v62  ;;  %v2946_v41 = vpop.f32.mrb[57].mxu1  ;;  %v1359_v33 = vmul.f32 %v2070_v44, %v2070_v44  ;;  %v1150_v4 = vsel %vm1036_vm0, %v2070_v44, 0.0 }
 0x1a5   : > { %3399 = vst [vmem:[#allocation24_spill] sm:$0xff] %v2946_v41  ;;  %v1148_v3 = vsel %vm1036_vm0, %v676_v21, 0.0  ;;  %v1358_v37 = vmul.f32 %v676_v21, %v676_v21 }
 0x1a6   : > { %v1149_v42 = vadd.f32 %v1148_v3, %v1147_v20  ;;  %v1540_v27 = vadd.f32 %v1539_v10, %v1538_v7  ;;  %v1543_v60 = vsel %vm1036_vm0, %v1359_v33, 0.0 }
 0x1a7   : > { %v1541_v45 = vsel %vm1036_vm0, %v1358_v37, 0.0  ;;  %v2073_v34 = vpop.f32.mrb[58].mxu0  ;;  %v2952_v56 = vpop.f32.mrb[58].mxu1 }
 0x1a8   : > { %3400 = vst [vmem:[#allocation25_spill] sm:$0xff] %v2952_v56  ;;  %v1542_v53 = vadd.f32 %v1541_v45, %v1540_v27  ;;  %v686_v14 = vpop.f32.mrb[59].mxu0  ;;  %v1151_v62 = vadd.f32 %v1150_v4, %v1149_v42  ;;  %v2954_v18 = vpop.f32.mrb[59].mxu1  ;;  %v1361_v8 = vmul.f32 %v2073_v34, %v2073_v34  ;;  %v1154_v44 = vsel %vm1036_vm0, %v2073_v34, 0.0 }
 0x1a9   : > { %3401 = vst [vmem:[#allocation26_spill] sm:$0xff] %v2954_v18  ;;  %v1152_v41 = vsel %vm1036_vm0, %v686_v14, 0.0  ;;  %v1360_v21 = vmul.f32 %v686_v14, %v686_v14 }
 0x1aa   : > { %v1153_v3 = vadd.f32 %v1152_v41, %v1151_v62  ;;  %v1544_v7 = vadd.f32 %v1543_v60, %v1542_v53  ;;  %v1547_v33 = vsel %vm1036_vm0, %v1361_v8, 0.0 }
 0x1ab   : > { %v1545_v20 = vsel %vm1036_vm0, %v1360_v21, 0.0  ;;  %v2076_v10 = vpop.f32.mrb[60].mxu0  ;;  %v2960_v37 = vpop.f32.mrb[60].mxu1 }
 0x1ac   : > { %3402 = vst [vmem:[#allocation27_spill] sm:$0xff] %v2960_v37  ;;  %v1546_v27 = vadd.f32 %v1545_v20, %v1544_v7  ;;  %v696_v45 = vpop.f32.mrb[61].mxu0  ;;  %v1155_v42 = vadd.f32 %v1154_v44, %v1153_v3  ;;  %v2962_v4 = vpop.f32.mrb[61].mxu1  ;;  %v1363_v56 = vmul.f32 %v2076_v10, %v2076_v10  ;;  %v1158_v34 = vsel %vm1036_vm0, %v2076_v10, 0.0 }
 0x1ad   : > { %v1156_v18 = vsel %vm1036_vm0, %v696_v45, 0.0  ;;  %v1362_v14 = vmul.f32 %v696_v45, %v696_v45  ;;  %v1366_v44 = vmul.f32 %v2724_v29, %v2724_v29 }
 0x1ae   : > { %v1157_v41 = vadd.f32 %v1156_v18, %v1155_v42  ;;  %v1548_v53 = vadd.f32 %v1547_v33, %v1546_v27  ;;  %v1551_v37 = vsel %vm1036_vm0, %v1363_v56, 0.0  ;;  %v1164_v33 = vsel %vm1036_vm0, %v2724_v29, 0.0 }
 0x1af   : > { %v1549_v62 = vsel %vm1036_vm0, %v1362_v14, 0.0  ;;  %v2079_v60 = vpop.f32.mrb[62].mxu0  ;;  %v2968_v21 = vpop.f32.mrb[62].mxu1  ;;  %v1368_v29 = vmul.f32 %v2731_v39, %v2731_v39 }
 0x1b0   : > { %v1550_v7 = vadd.f32 %v1549_v62, %v1548_v53  ;;  %v706_v20 = vpop.f32.mrb[63].mxu0  ;;  %v1159_v3 = vadd.f32 %v1158_v34, %v1157_v41  ;;  %v2972_v8 = vpop.f32.mrb[63].mxu1  ;;  %v1365_v45 = vmul.f32 %v2079_v60, %v2079_v60  ;;  %v1162_v14 = vsel %vm1036_vm0, %v2079_v60, 0.0 }
 0x1b1   : > { %v1160_v18 = vsel %vm1036_vm0, %v706_v20, 0.0  ;;  %v1364_v27 = vmul.f32 %v706_v20, %v706_v20  ;;  %v2406_v62 = vmov 0.0  }
 0x1b2   : > { %v1161_v10 = vadd.f32 %v1160_v18, %v1159_v3  ;;  %v1552_v42 = vadd.f32 %v1551_v37, %v1550_v7  ;;  %184 = vst.msk [vmem:[#allocation2] sm:$0x1] %vm183_vm1, %v2406_v62  ;;  %185 = vst.msk [vmem:[#allocation3] sm:$0x1] %vm183_vm1, %v2406_v62  ;;  %v1555_v56 = vsel %vm1036_vm0, %v1365_v45, 0.0  ;;  %v1367_v37 = vmul.f32 %v2721_v25, %v2721_v25 }
 0x1b3   : > { %v1553_v41 = vsel %vm1036_vm0, %v1364_v27, 0.0  ;;  %v1557_v7 = vsel %vm1036_vm0, %v1366_v44, 0.0  ;;  %v1166_v3 = vsel %vm1036_vm0, %v2721_v25, 0.0  ;;  %v1168_v18 = vsel %vm1036_vm0, %v2731_v39, 0.0 }
 0x1b4   : > { %v1163_v53 = vadd.f32 %v1162_v14, %v1161_v10  ;;  %v1554_v34 = vadd.f32 %v1553_v41, %v1552_v42  ;;  %v1559_v45 = vsel %vm1036_vm0, %v1367_v37, 0.0  ;;  %v1369_v42 = vmul.f32 %v2729_v36, %v2729_v36 }
 0x1b5   : > { %v1561_v44 = vsel %vm1036_vm0, %v1368_v29, 0.0  ;;  %v1370_v14 = vmul.f32 %v2738_v51, %v2738_v51  ;;  %v1170_v25 = vsel %vm1036_vm0, %v2729_v36, 0.0  ;;  %v1172_v39 = vsel %vm1036_vm0, %v2738_v51, 0.0 }
 0x1b6   : > { %v1556_v60 = vadd.f32 %v1555_v56, %v1554_v34  ;;  %v1165_v20 = vadd.f32 %v1164_v33, %v1163_v53  ;;  %v1563_v62 = vsel %vm1036_vm0, %v1369_v42, 0.0  ;;  %v1371_v56 = vmul.f32 %v2736_v47, %v2736_v47 }
 0x1b7   : > { %v1565_v37 = vsel %vm1036_vm0, %v1370_v14, 0.0  ;;  %v1174_v36 = vsel %vm1036_vm0, %v2736_v47, 0.0  ;;  %v1176_v51 = vsel %vm1036_vm0, %v2746_v1, 0.0  ;;  %v1178_v47 = vsel %vm1036_vm0, %v2744_v61, 0.0 }
 0x1b8   : > { %v1167_v27 = vadd.f32 %v1166_v3, %v1165_v20  ;;  %v1558_v10 = vadd.f32 %v1557_v7, %v1556_v60  ;;  %v1372_v7 = vmul.f32 %v2746_v1, %v2746_v1  ;;  %v1180_v1 = vsel %vm1036_vm0, %v2754_v15, 0.0 }
 0x1ba   : > { %v1560_v41 = vadd.f32 %v1559_v45, %v1558_v10  ;;  %v1169_v33 = vadd.f32 %v1168_v18, %v1167_v27  ;;  %v1567_v18 = vsel %vm1036_vm0, %v1371_v56, 0.0  ;;  %v1373_v27 = vmul.f32 %v2744_v61, %v2744_v61 }
 0x1bb   : > { %v1569_v10 = vsel %vm1036_vm0, %v1372_v7, 0.0  ;;  %v1374_v45 = vmul.f32 %v2754_v15, %v2754_v15  ;;  %v1182_v61 = vsel %vm1036_vm0, %v2752_v11, 0.0  ;;  %v1184_v15 = vsel %vm1036_vm0, %v2762_v31, 0.0 }
 0x1bc   : > { %v1171_v53 = vadd.f32 %v1170_v25, %v1169_v33  ;;  %v1562_v34 = vadd.f32 %v1561_v44, %v1560_v41  ;;  %v1571_v33 = vsel %vm1036_vm0, %v1373_v27, 0.0  ;;  %v1375_v25 = vmul.f32 %v2752_v11, %v2752_v11 }
 0x1bd   : > { %v1186_v11 = vsel %vm1036_vm0, %v2760_v26, 0.0 }
 0x1be   : > { %v1564_v29 = vadd.f32 %v1563_v62, %v1562_v34  ;;  %v1173_v60 = vadd.f32 %v1172_v39, %v1171_v53  ;;  %v1573_v39 = vsel %vm1036_vm0, %v1374_v45, 0.0  ;;  %v1376_v53 = vmul.f32 %v2762_v31, %v2762_v31 }
 0x1bf   : > { %v1575_v7 = vsel %vm1036_vm0, %v1375_v25, 0.0  ;;  %v1188_v31 = vsel %vm1036_vm0, %v2770_v48, 0.0 }
 0x1c0   : > { %v1566_v20 = vadd.f32 %v1565_v37, %v1564_v29  ;;  %v1175_v3 = vadd.f32 %v1174_v36, %v1173_v60  ;;  %v1377_v29 = vmul.f32 %v2760_v26, %v2760_v26  ;;  %v1577_v60 = vsel %vm1036_vm0, %v1376_v53, 0.0 }
 0x1c1   : > { %v1378_v36 = vmul.f32 %v2770_v48, %v2770_v48  ;;  %v1190_v26 = vsel %vm1036_vm0, %v2768_v43, 0.0  ;;  %v1192_v48 = vsel %vm1036_vm0, %v2778_v0, 0.0 }
 0x1c2   : > { %v1177_v42 = vadd.f32 %v1176_v51, %v1175_v3  ;;  %v1568_v44 = vadd.f32 %v1567_v18, %v1566_v20  ;;  %v1579_v27 = vsel %vm1036_vm0, %v1377_v29, 0.0 }
 0x1c3   : > { %v1581_v45 = vsel %vm1036_vm0, %v1378_v36, 0.0 }
 0x1c4   : > { %v1570_v14 = vadd.f32 %v1569_v10, %v1568_v44  ;;  %v1179_v41 = vadd.f32 %v1178_v47, %v1177_v42  ;;  %v1379_v10 = vmul.f32 %v2768_v43, %v2768_v43  ;;  %v1380_v42 = vmul.f32 %v2778_v0, %v2778_v0 }
 0x1c5   : > { %v1194_v43 = vsel %vm1036_vm0, %v2776_v59, 0.0  ;;  %v1196_v0 = vsel %vm1036_vm0, %v2786_v17, 0.0 }
 0x1c6   : > { %v1181_v34 = vadd.f32 %v1180_v1, %v1179_v41  ;;  %v1572_v62 = vadd.f32 %v1571_v33, %v1570_v14  ;;  %v1583_v41 = vsel %vm1036_vm0, %v1379_v10, 0.0  ;;  %v1381_v33 = vmul.f32 %v2776_v59, %v2776_v59 }
 0x1c7   : > { %v1585_v25 = vsel %vm1036_vm0, %v1380_v42, 0.0  ;;  %v1198_v59 = vsel %vm1036_vm0, %v2784_v12, 0.0 }
 0x1c8   : > { %v1574_v56 = vadd.f32 %v1573_v39, %v1572_v62  ;;  %v1183_v37 = vadd.f32 %v1182_v61, %v1181_v34  ;;  %v1382_v39 = vmul.f32 %v2786_v17, %v2786_v17  ;;  %v1200_v17 = vsel %vm1036_vm0, %v2794_v35, 0.0 }
 0x1ca   : > { %v1185_v51 = vadd.f32 %v1184_v15, %v1183_v37  ;;  %v1576_v20 = vadd.f32 %v1575_v7, %v1574_v56  ;;  %v1587_v15 = vsel %vm1036_vm0, %v1381_v33, 0.0  ;;  %v1383_v56 = vmul.f32 %v2784_v12, %v2784_v12 }
 0x1cb   : > { %v1589_v37 = vsel %vm1036_vm0, %v1382_v39, 0.0  ;;  %v1384_v7 = vmul.f32 %v2794_v35, %v2794_v35  ;;  %v1202_v12 = vsel %vm1036_vm0, %v2792_v30, 0.0  ;;  %v1204_v35 = vsel %vm1036_vm0, %v2802_v55, 0.0 }
 0x1cc   : > { %v1578_v3 = vadd.f32 %v1577_v60, %v1576_v20  ;;  %v1187_v18 = vadd.f32 %v1186_v11, %v1185_v51  ;;  %v1591_v20 = vsel %vm1036_vm0, %v1383_v56, 0.0  ;;  %v1385_v11 = vmul.f32 %v2792_v30, %v2792_v30 }
 0x1cd   : > { %v1206_v30 = vsel %vm1036_vm0, %v2800_v50, 0.0 }
 0x1ce   : > { %v1189_v44 = vadd.f32 %v1188_v31, %v1187_v18  ;;  %v1580_v47 = vadd.f32 %v1579_v27, %v1578_v3  ;;  %v1593_v31 = vsel %vm1036_vm0, %v1384_v7, 0.0  ;;  %v1386_v3 = vmul.f32 %v2802_v55, %v2802_v55 }
 0x1cf   : > { %v1595_v42 = vsel %vm1036_vm0, %v1385_v11, 0.0  ;;  %v1208_v55 = vsel %vm1036_vm0, %v2810_v9, 0.0 }
 0x1d0   : > { %v1582_v1 = vadd.f32 %v1581_v45, %v1580_v47  ;;  %v1191_v14 = vadd.f32 %v1190_v26, %v1189_v44  ;;  %v1387_v44 = vmul.f32 %v2800_v50, %v2800_v50  ;;  %v1597_v47 = vsel %vm1036_vm0, %v1386_v3, 0.0 }
 0x1d1   : > { %v1388_v26 = vmul.f32 %v2810_v9, %v2810_v9  ;;  %v1210_v50 = vsel %vm1036_vm0, %v2808_v5, 0.0  ;;  %v1212_v9 = vsel %vm1036_vm0, %v2818_v32, 0.0 }
 0x1d2   : > { %v1193_v53 = vadd.f32 %v1192_v48, %v1191_v14  ;;  %v1584_v34 = vadd.f32 %v1583_v41, %v1582_v1  ;;  %v1599_v33 = vsel %vm1036_vm0, %v1387_v44, 0.0 }
 0x1d3   : > { %v1601_v39 = vsel %vm1036_vm0, %v1388_v26, 0.0 }
 0x1d4   : > { %v1586_v62 = vadd.f32 %v1585_v25, %v1584_v34  ;;  %v1195_v61 = vadd.f32 %v1194_v43, %v1193_v53  ;;  %v1389_v25 = vmul.f32 %v2808_v5, %v2808_v5  ;;  %v1390_v53 = vmul.f32 %v2818_v32, %v2818_v32 }
 0x1d5   : > { %v1214_v5 = vsel %vm1036_vm0, %v2816_v23, 0.0  ;;  %v1216_v32 = vsel %vm1036_vm0, %v2826_v54, 0.0 }
 0x1d6   : > { %v1197_v29 = vadd.f32 %v1196_v0, %v1195_v61  ;;  %v1588_v60 = vadd.f32 %v1587_v15, %v1586_v62  ;;  %v1603_v61 = vsel %vm1036_vm0, %v1389_v25, 0.0  ;;  %v1391_v15 = vmul.f32 %v2816_v23, %v2816_v23 }
 0x1d7   : > { %v1605_v56 = vsel %vm1036_vm0, %v1390_v53, 0.0  ;;  %v1218_v23 = vsel %vm1036_vm0, %v2824_v46, 0.0 }
 0x1d8   : > { %v1590_v36 = vadd.f32 %v1589_v37, %v1588_v60  ;;  %v1199_v51 = vadd.f32 %v1198_v59, %v1197_v29  ;;  %v1392_v37 = vmul.f32 %v2826_v54, %v2826_v54  ;;  %v1220_v54 = vsel %vm1036_vm0, %v2834_v13, 0.0 }
 0x1da   : > { %v1201_v18 = vadd.f32 %v1200_v17, %v1199_v51  ;;  %v1592_v27 = vadd.f32 %v1591_v20, %v1590_v36  ;;  %v1607_v17 = vsel %vm1036_vm0, %v1391_v15, 0.0  ;;  %v1393_v36 = vmul.f32 %v2824_v46, %v2824_v46 }
 0x1db   : > { %v1609_v51 = vsel %vm1036_vm0, %v1392_v37, 0.0  ;;  %v1394_v20 = vmul.f32 %v2834_v13, %v2834_v13  ;;  %v1222_v46 = vsel %vm1036_vm0, %v2832_v6, 0.0  ;;  %v1224_v13 = vsel %vm1036_vm0, %v2842_v38, 0.0 }
 0x1dc   : > { %v1594_v10 = vadd.f32 %v1593_v31, %v1592_v27  ;;  %v1203_v45 = vadd.f32 %v1202_v12, %v1201_v18  ;;  %v1611_v27 = vsel %vm1036_vm0, %v1393_v36, 0.0  ;;  %v1395_v12 = vmul.f32 %v2832_v6, %v2832_v6 }
 0x1dd   : > { %v1226_v6 = vsel %vm1036_vm0, %v2840_v28, 0.0 }
 0x1de   : > { %v1205_v48 = vadd.f32 %v1204_v35, %v1203_v45  ;;  %v1596_v1 = vadd.f32 %v1595_v42, %v1594_v10  ;;  %v1613_v35 = vsel %vm1036_vm0, %v1394_v20, 0.0  ;;  %v1396_v10 = vmul.f32 %v2842_v38, %v2842_v38 }
 0x1df   : > { %v1615_v26 = vsel %vm1036_vm0, %v1395_v12, 0.0  ;;  %v1228_v38 = vsel %vm1036_vm0, %v2850_v63, 0.0 }
 0x1e0   : > { %v1598_v14 = vadd.f32 %v1597_v47, %v1596_v1  ;;  %v1207_v41 = vadd.f32 %v1206_v30, %v1205_v48  ;;  %v1397_v48 = vmul.f32 %v2840_v28, %v2840_v28  ;;  %v1617_v1 = vsel %vm1036_vm0, %v1396_v10, 0.0 }
 0x1e1   : > { %v1398_v30 = vmul.f32 %v2850_v63, %v2850_v63  ;;  %v1230_v28 = vsel %vm1036_vm0, %v2848_v57, 0.0  ;;  %v1232_v63 = vsel %vm1036_vm0, %v2858_v24, 0.0 }
 0x1e2   : > { %v1209_v34 = vadd.f32 %v1208_v55, %v1207_v41  ;;  %v1600_v43 = vadd.f32 %v1599_v33, %v1598_v14  ;;  %v1619_v25 = vsel %vm1036_vm0, %v1397_v48, 0.0 }
 0x1e3   : > { %v1621_v53 = vsel %vm1036_vm0, %v1398_v30, 0.0 }
 0x1e4   : > { %v1602_v0 = vadd.f32 %v1601_v39, %v1600_v43  ;;  %v1211_v62 = vadd.f32 %v1210_v50, %v1209_v34  ;;  %v1399_v39 = vmul.f32 %v2848_v57, %v2848_v57  ;;  %v1400_v34 = vmul.f32 %v2858_v24, %v2858_v24 }
 0x1e5   : > { %v1234_v57 = vsel %vm1036_vm0, %v2856_v19, 0.0  ;;  %v1236_v24 = vsel %vm1036_vm0, %v2866_v58, 0.0 }
 0x1e6   : > { %v1213_v7 = vadd.f32 %v1212_v9, %v1211_v62  ;;  %v1604_v29 = vadd.f32 %v1603_v61, %v1602_v0  ;;  %v1623_v62 = vsel %vm1036_vm0, %v1399_v39, 0.0  ;;  %v1401_v61 = vmul.f32 %v2856_v19, %v2856_v19 }
 0x1e7   : > { %v1625_v15 = vsel %vm1036_vm0, %v1400_v34, 0.0  ;;  %v1238_v19 = vsel %vm1036_vm0, %v2864_v49, 0.0 }
 0x1e8   : > { %v1606_v60 = vadd.f32 %v1605_v56, %v1604_v29  ;;  %v1215_v59 = vadd.f32 %v1214_v5, %v1213_v7  ;;  %v1402_v56 = vmul.f32 %v2866_v58, %v2866_v58  ;;  %v1240_v58 = vsel %vm1036_vm0, %v2874_v22, 0.0 }
 0x1ea   : > { %v1217_v11 = vadd.f32 %v1216_v32, %v1215_v59  ;;  %v1608_v31 = vadd.f32 %v1607_v17, %v1606_v60  ;;  %v1627_v32 = vsel %vm1036_vm0, %v1401_v61, 0.0  ;;  %v1403_v60 = vmul.f32 %v2864_v49, %v2864_v49 }
 0x1eb   : > { %v1629_v59 = vsel %vm1036_vm0, %v1402_v56, 0.0  ;;  %v1404_v17 = vmul.f32 %v2874_v22, %v2874_v22  ;;  %v1242_v49 = vsel %vm1036_vm0, %v2872_v16, 0.0  ;;  %v1244_v22 = vsel %vm1036_vm0, %v2882_v2, 0.0 }
 0x1ec   : > { %v1610_v3 = vadd.f32 %v1609_v51, %v1608_v31  ;;  %v1219_v18 = vadd.f32 %v1218_v23, %v1217_v11  ;;  %v1631_v31 = vsel %vm1036_vm0, %v1403_v60, 0.0  ;;  %v1405_v23 = vmul.f32 %v2872_v16, %v2872_v16 }
 0x1ed   : > { %v1246_v16 = vsel %vm1036_vm0, %v2880_v52, 0.0 }
 0x1ee   : > { %v1221_v45 = vadd.f32 %v1220_v54, %v1219_v18  ;;  %v1612_v42 = vadd.f32 %v1611_v27, %v1610_v3  ;;  %v1633_v54 = vsel %vm1036_vm0, %v1404_v17, 0.0  ;;  %v1406_v3 = vmul.f32 %v2882_v2, %v2882_v2 }
 0x1ef   : > { %v1635_v10 = vsel %vm1036_vm0, %v1405_v23, 0.0  ;;  %v1248_v2 = vsel %vm1036_vm0, %v2890_v40, 0.0 }
 0x1f0   : > { %v1614_v44 = vadd.f32 %v1613_v35, %v1612_v42  ;;  %v1223_v47 = vadd.f32 %v1222_v46, %v1221_v45  ;;  %v1407_v45 = vmul.f32 %v2880_v52, %v2880_v52  ;;  %v1637_v42 = vsel %vm1036_vm0, %v1406_v3, 0.0 }
 0x1f1   : > { %v1408_v46 = vmul.f32 %v2890_v40, %v2890_v40 }
 0x1f2   : > { %v1225_v55 = vadd.f32 %v1224_v13, %v1223_v47  ;;  %v1616_v14 = vadd.f32 %v1615_v26, %v1614_v44  ;;  %v1639_v48 = vsel %vm1036_vm0, %v1407_v45, 0.0  ;;  %v3412_v45 = vld [vmem:[#allocation20_spill] sm:$0xff] }
 0x1f4   : > { %v1618_v41 = vadd.f32 %v1617_v1, %v1616_v14  ;;  %v1227_v33 = vadd.f32 %v1226_v6, %v1225_v55  ;;  %v3403_v1 = vld [vmem:[#allocation10_spill] sm:$0xff]  ;;  %v1641_v55 = vsel %vm1036_vm0, %v1408_v46, 0.0  ;;  %v3404_v14 = vld [vmem:[#allocation12_spill] sm:$0xff] }
 0x1f5   : > { %v1409_v30 = vmul.f32 %v3403_v1, %v3403_v1  ;;  %v1410_v6 = vmul.f32 %v3404_v14, %v3404_v14  ;;  %v1250_v52 = vsel %vm1036_vm0, %v3403_v1, 0.0  ;;  %v1252_v40 = vsel %vm1036_vm0, %v3404_v14, 0.0 }
 0x1f6   : > { %v1229_v43 = vadd.f32 %v1228_v38, %v1227_v33  ;;  %v1620_v50 = vadd.f32 %v1619_v25, %v1618_v41 }
 0x1f7   : > { %v1643_v39 = vsel %vm1036_vm0, %v1409_v30, 0.0 }
 0x1f8   : > { %v1622_v9 = vadd.f32 %v1621_v53, %v1620_v50  ;;  %v1231_v0 = vadd.f32 %v1230_v28, %v1229_v43  ;;  %v3405_v53 = vld [vmem:[#allocation11_spill] sm:$0xff]  ;;  %v1645_v43 = vsel %vm1036_vm0, %v1410_v6, 0.0  ;;  %v3406_v50 = vld [vmem:[#allocation14_spill] sm:$0xff] }
 0x1f9   : > { %v1411_v34 = vmul.f32 %v3405_v53, %v3405_v53  ;;  %v1412_v28 = vmul.f32 %v3406_v50, %v3406_v50 }
 0x1fa   : > { %v1233_v37 = vadd.f32 %v1232_v63, %v1231_v0  ;;  %v1624_v7 = vadd.f32 %v1623_v62, %v1622_v9  ;;  %v1254_v0 = vsel %vm1036_vm0, %v3405_v53, 0.0  ;;  %v1256_v62 = vsel %vm1036_vm0, %v3406_v50, 0.0 }
 0x1fb   : > { %v1647_v56 = vsel %vm1036_vm0, %v1411_v34, 0.0 }
 0x1fc   : > { %v1626_v29 = vadd.f32 %v1625_v15, %v1624_v7  ;;  %v1235_v5 = vadd.f32 %v1234_v57, %v1233_v37  ;;  %v3407_v37 = vld [vmem:[#allocation13_spill] sm:$0xff]  ;;  %v1649_v57 = vsel %vm1036_vm0, %v1412_v28, 0.0 }
 0x1fd   : > { %v1413_v7 = vmul.f32 %v3407_v37, %v3407_v37  ;;  %v1258_v60 = vsel %vm1036_vm0, %v3407_v37, 0.0 }
 0x1fe   : > { %v1237_v36 = vadd.f32 %v1236_v24, %v1235_v5  ;;  %v1628_v51 = vadd.f32 %v1627_v32, %v1626_v29  ;;  %v3408_v24 = vld [vmem:[#allocation16_spill] sm:$0xff] }
 0x1ff   : > { %v1414_v29 = vmul.f32 %v3408_v24, %v3408_v24 }
 0x200   : > { %v1630_v20 = vadd.f32 %v1629_v59, %v1628_v51  ;;  %v1239_v11 = vadd.f32 %v1238_v19, %v1237_v36  ;;  %v1260_v59 = vsel %vm1036_vm0, %v3408_v24, 0.0  ;;  %v1651_v51 = vsel %vm1036_vm0, %v1413_v7, 0.0  ;;  %v3409_v19 = vld [vmem:[#allocation15_spill] sm:$0xff] }
 0x201   : > { %v1262_v3 = vsel %vm1036_vm0, %v3409_v19, 0.0 }
 0x202   : > { %v1241_v18 = vadd.f32 %v1240_v58, %v1239_v11  ;;  %v1632_v27 = vadd.f32 %v1631_v31, %v1630_v20  ;;  %v1415_v58 = vmul.f32 %v3409_v19, %v3409_v19  ;;  %v1653_v20 = vsel %vm1036_vm0, %v1414_v29, 0.0  ;;  %v3410_v11 = vld [vmem:[#allocation18_spill] sm:$0xff] }
 0x203   : > { %v1416_v31 = vmul.f32 %v3410_v11, %v3410_v11 }
 0x204   : > { %v1634_v12 = vadd.f32 %v1633_v54, %v1632_v27  ;;  %v1243_v35 = vadd.f32 %v1242_v49, %v1241_v18  ;;  %v1264_v18 = vsel %vm1036_vm0, %v3410_v11, 0.0 }
 0x206   : > { %v1245_v13 = vadd.f32 %v1244_v22, %v1243_v35  ;;  %v1636_v44 = vadd.f32 %v1635_v10, %v1634_v12  ;;  %v1655_v22 = vsel %vm1036_vm0, %v1415_v58, 0.0  ;;  %v3411_v12 = vld [vmem:[#allocation17_spill] sm:$0xff]  ;;  %v1657_v10 = vsel %vm1036_vm0, %v1416_v31, 0.0 }
 0x207   : > { %v1417_v35 = vmul.f32 %v3411_v12, %v3411_v12 }
 0x208   : > { %v1638_v47 = vadd.f32 %v1637_v42, %v1636_v44  ;;  %v1247_v26 = vadd.f32 %v1246_v16, %v1245_v13  ;;  %v1418_v42 = vmul.f32 %v3412_v45, %v3412_v45  ;;  %v1266_v44 = vsel %vm1036_vm0, %v3411_v12, 0.0 }
 0x209   : > { %v1268_v16 = vsel %vm1036_vm0, %v3412_v45, 0.0 }
 0x20a   : > { %v1249_v38 = vadd.f32 %v1248_v2, %v1247_v26  ;;  %v1640_v41 = vadd.f32 %v1639_v48, %v1638_v47  ;;  %v1659_v26 = vsel %vm1036_vm0, %v1417_v35, 0.0  ;;  %v3413_v48 = vld [vmem:[#allocation19_spill] sm:$0xff]  ;;  %v1661_v30 = vsel %vm1036_vm0, %v1418_v42, 0.0 }
 0x20b   : > { %v1419_v1 = vmul.f32 %v3413_v48, %v3413_v48  ;;  %v1428_v35 = vmul.f32 %v2972_v8, %v2972_v8 }
 0x20c   : > { %v1642_v33 = vadd.f32 %v1641_v55, %v1640_v41  ;;  %v1251_v25 = vadd.f32 %v1250_v52, %v1249_v38  ;;  %v3414_v55 = vld [vmem:[#allocation22_spill] sm:$0xff]  ;;  %v1270_v41 = vsel %vm1036_vm0, %v3413_v48, 0.0  ;;  %v1290_v48 = vsel %vm1036_vm0, %v2968_v21, 0.0 }
 0x20d   : > { %v1420_v14 = vmul.f32 %v3414_v55, %v3414_v55  ;;  %v1272_v52 = vsel %vm1036_vm0, %v3414_v55, 0.0 }
 0x20e   : > { %v1253_v63 = vadd.f32 %v1252_v40, %v1251_v25  ;;  %v1644_v9 = vadd.f32 %v1643_v39, %v1642_v33  ;;  %v1663_v25 = vsel %vm1036_vm0, %v1419_v1, 0.0  ;;  %v3415_v39 = vld [vmem:[#allocation21_spill] sm:$0xff] }
 0x20f   : > { %v1421_v53 = vmul.f32 %v3415_v39, %v3415_v39  ;;  %v1665_v34 = vsel %vm1036_vm0, %v1420_v14, 0.0 }
 0x210   : > { %v1646_v61 = vadd.f32 %v1645_v43, %v1644_v9  ;;  %v1255_v15 = vadd.f32 %v1254_v0, %v1253_v63  ;;  %v3416_v43 = vld [vmem:[#allocation24_spill] sm:$0xff]  ;;  %v1274_v9 = vsel %vm1036_vm0, %v3415_v39, 0.0 }
 0x211   : > { %v1422_v50 = vmul.f32 %v3416_v43, %v3416_v43  ;;  %v1276_v0 = vsel %vm1036_vm0, %v3416_v43, 0.0 }
 0x212   : > { %v1257_v5 = vadd.f32 %v1256_v62, %v1255_v15  ;;  %v1648_v32 = vadd.f32 %v1647_v56, %v1646_v61  ;;  %v1667_v15 = vsel %vm1036_vm0, %v1421_v53, 0.0  ;;  %v3417_v56 = vld [vmem:[#allocation23_spill] sm:$0xff]  ;;  %v1035_v53 = vld [vmem:[#allocation2] sm:$0x1] }
 0x213   : > { %v1423_v37 = vmul.f32 %v3417_v56, %v3417_v56  ;;  %v1669_v7 = vsel %vm1036_vm0, %v1422_v50, 0.0 }
 0x214   : > { %v1650_v17 = vadd.f32 %v1649_v57, %v1648_v32  ;;  %v1259_v36 = vadd.f32 %v1258_v60, %v1257_v5  ;;  %v3418_v57 = vld [vmem:[#allocation26_spill] sm:$0xff]  ;;  %v1278_v32 = vsel %vm1036_vm0, %v3417_v56, 0.0 }
 0x215   : > { %v1424_v24 = vmul.f32 %v3418_v57, %v3418_v57  ;;  %v1280_v60 = vsel %vm1036_vm0, %v3418_v57, 0.0 }
 0x216   : > { %v1261_v23 = vadd.f32 %v1260_v59, %v1259_v36  ;;  %v1652_v54 = vadd.f32 %v1651_v51, %v1650_v17  ;;  %v1671_v36 = vsel %vm1036_vm0, %v1423_v37, 0.0  ;;  %v3419_v51 = vld [vmem:[#allocation25_spill] sm:$0xff] }
 0x217   : > { %v1425_v19 = vmul.f32 %v3419_v51, %v3419_v51  ;;  %v1673_v58 = vsel %vm1036_vm0, %v1424_v24, 0.0 }
 0x218   : > { %v1654_v27 = vadd.f32 %v1653_v20, %v1652_v54  ;;  %v1263_v49 = vadd.f32 %v1262_v3, %v1261_v23  ;;  %v1426_v20 = vmul.f32 %v2962_v4, %v2962_v4  ;;  %v1282_v23 = vsel %vm1036_vm0, %v3419_v51, 0.0 }
 0x219   : > { %v1284_v54 = vsel %vm1036_vm0, %v2962_v4, 0.0  ;;  %v1288_v4 = vsel %vm1036_vm0, %v2972_v8, 0.0 }
 0x21a   : > { %v1265_v46 = vadd.f32 %v1264_v18, %v1263_v49  ;;  %v1656_v13 = vadd.f32 %v1655_v22, %v1654_v27  ;;  %v1675_v27 = vsel %vm1036_vm0, %v1425_v19, 0.0  ;;  %v3420_v49 = vld [vmem:[#allocation27_spill] sm:$0xff]  ;;  %v1677_v12 = vsel %vm1036_vm0, %v1426_v20, 0.0 }
 0x21b   : > { %v1427_v22 = vmul.f32 %v3420_v49, %v3420_v49  ;;  %v1286_v42 = vsel %vm1036_vm0, %v3420_v49, 0.0 }
 0x21c   : > { %v1658_v2 = vadd.f32 %v1657_v10, %v1656_v13  ;;  %v1267_v47 = vadd.f32 %v1266_v44, %v1265_v46 }
 0x21d   : > { %v1679_v44 = vsel %vm1036_vm0, %v1427_v22, 0.0 }
 0x21e   : > { %v1269_v6 = vadd.f32 %v1268_v16, %v1267_v47  ;;  %v1660_v38 = vadd.f32 %v1659_v26, %v1658_v2  ;;  %v1429_v16 = vmul.f32 %v2968_v21, %v2968_v21  ;;  %v1681_v2 = vsel %vm1036_vm0, %v1428_v35, 0.0  ;;  %v1301_v21 = vld [vmem:[#allocation3] sm:$0x1] }
 0x220   : > { %v1662_v40 = vadd.f32 %v1661_v30, %v1660_v38  ;;  %v1271_v33 = vadd.f32 %v1270_v41, %v1269_v6  ;;  %v1683_v55 = vsel %vm1036_vm0, %v1429_v16, 0.0 }
 0x222   : > { %v1273_v28 = vadd.f32 %v1272_v52, %v1271_v33  ;;  %v1664_v63 = vadd.f32 %v1663_v25, %v1662_v40 }
 0x224   : > { %v1666_v62 = vadd.f32 %v1665_v34, %v1664_v63  ;;  %v1275_v61 = vadd.f32 %v1274_v9, %v1273_v28 }
 0x226   : > { %v1277_v29 = vadd.f32 %v1276_v0, %v1275_v61  ;;  %v1668_v5 = vadd.f32 %v1667_v15, %v1666_v62 }
 0x228   : > { %v1670_v59 = vadd.f32 %v1669_v7, %v1668_v5  ;;  %v1279_v17 = vadd.f32 %v1278_v32, %v1277_v29 }
 0x22a   : > { %v1281_v11 = vadd.f32 %v1280_v60, %v1279_v17  ;;  %v1672_v31 = vadd.f32 %v1671_v36, %v1670_v59 }
 0x22c   : > { %v1674_v3 = vadd.f32 %v1673_v58, %v1672_v31  ;;  %v1283_v18 = vadd.f32 %v1282_v23, %v1281_v11 }
 0x22e   : > { %v1285_v10 = vadd.f32 %v1284_v54, %v1283_v18  ;;  %v1676_v45 = vadd.f32 %v1675_v27, %v1674_v3 }
 0x230   : > { %v1678_v46 = vadd.f32 %v1677_v12, %v1676_v45  ;;  %v1287_v13 = vadd.f32 %v1286_v42, %v1285_v10 }
 0x232   : > { %v1289_v47 = vadd.f32 %v1288_v4, %v1287_v13  ;;  %v1680_v26 = vadd.f32 %v1679_v44, %v1678_v46 }
 0x234   : > { %v1291_v1 = vadd.f32 %v1290_v48, %v1289_v47  ;;  %v1682_v30 = vadd.f32 %v1681_v2, %v1680_v26 }
 0x236   : > { %v1292_v14 = vrot.slane %v1291_v1, 4  ;;  %v1684_v8 = vadd.f32 %v1683_v55, %v1682_v30 }
 0x238   : > { %v1293_v6 = vadd.f32 %v1292_v14, %v1291_v1  ;;  %v1685_v38 = vrot.slane %v1684_v8, 4 }
 0x23a   : > { %v1294_v41 = vrot.slane %v1293_v6, 2  ;;  %v1686_v52 = vadd.f32 %v1685_v38, %v1684_v8 }
 0x23c   : > { %v1295_v40 = vadd.f32 %v1294_v41, %v1293_v6  ;;  %v1687_v33 = vrot.slane %v1686_v52, 2 }
 0x23e   : > { %v1296_v25 = vrot.slane %v1295_v40, 1  ;;  %v1688_v39 = vadd.f32 %v1687_v33, %v1686_v52 }
 0x240   : > { %v1297_v34 = vadd.f32 %v1296_v25, %v1295_v40  ;;  %v1689_v43 = vrot.slane %v1688_v39, 1 }
 0x242   : > { %v1298_v50 = vadd.f32 %v1297_v34, %v1035_v53  ;;  %v1690_v28 = vadd.f32 %v1689_v43, %v1688_v39 }
 0x244   : > { %1300 = vst.msk [vmem:[#allocation2] sm:$0x1] %vm183_vm1, %v1298_v50  ;;  %v1691_v63 = vadd.f32 %v1690_v28, %v1301_v21 }
 0x246   : > { %1692 = vst.msk [vmem:[#allocation3] sm:$0x1] %vm183_vm1, %v1691_v63 }
 0x24b   : > { %v1696_v9 = vld [vmem:[#allocation2] sm:$0x1] }
 0x24c   : > { %1697 = vst.msk [vmem:[%s176_s4] sm:$0x1] %vm183_vm1, %v1696_v9 }
 0x24d   : > { %v1698_v0 = vld [vmem:[#allocation3] sm:$0x1] }
 0x24e   : > { %1699 = vst.msk [vmem:[%s176_s4 + $0x1] sm:$0x1] %vm183_vm1, %v1698_v0 }
 0x24f   : > { %2332 = shalt.err (!%p2329_p5)
}
 0x250   : > { %s2333_s3 = scalar_lea.hbm %s3307_s18, 32  ;;  %s2337_s28 = scalar_lea.hbm %s3359_s2, 64 }
 0x251   : > { %p2334_p4 = scmp.ne.s32.totalorder %s3307_s18, %s2333_s3  ;;  %p2338_p12 = scmp.lt.u32.totalorder %s3307_s18, %s3359_s2 }
 0x252   : > { %p2339_p1 = scmp.lt.u32.totalorder %s2337_s28, %s2333_s3  ;;  %p2341_p8 = scmp.lt.u32.totalorder %s2333_s3, %s3307_s18 }
 0x253   : > { %p2335_p7 = pnand %p2334_p4, %p3421_p9 }
 0x254   : > { %p2340_p3 = por %p2339_p1, %p2338_p12 }
 0x255   : > { %p2336_p10 = pneg %p2335_p7 }
 0x256   : > { %p2342_p11 = por %p2341_p8, %p2340_p3 }
 0x258   : > { %p2343_p0 = pnand %p2342_p11, %p2336_p10 }
 0x25a   : > { %2346 = shalt.err (!%p2343_p0)
}
 0x25b   : > { %2226 = dma.vmem_to_hbm [thread:$0]  (%p3421_p9), %s3309_s5, 32, %s3307_s18, %s1701_s19  }
 0x25c PF: > { %s1726_s8 = sand.u32 1, %s2381_s9   ;;  %p3422_p6 = scmp.ne.s32.totalorder %s3382_s24, 0 }
 0x25d   : > { %p3423_p13 = scmp.ge.s32.totalorder %s2401_s14, 2  ;;  %s1727_s15 = scalar_lea.sflag [#allocation6], %s1726_s8 }
 0x25f   : > { %p2233_p2 = pnand %p3423_p13, %p3422_p6 }
 0x261   : > { %2376 = dma.done.wait (!%p2233_p2), %s1727_s15, 32  }
 0x262   : > { %2378 = vsyncadd (!%p2233_p2), %s1727_s15, 4294967264  ;;  %s18_s14 = sadd.s32 1, %s2401_s14   ;;  %s3424_s9 = smov %s2385_s10 }
 0x263   : > { %p15_p5 = scmp.ge.s32.totalorder %s18_s14, 4   ;;  %s3425_s10 = smov %s2389_s11 }
 0x264   : > { %s3426_s11 = smov %s2479_s23  ;;  %s3427_s12 = smov %s2397_s13 }
 0x265   : > { %s3428_s13 = smov %s3430_s17  ;;  %17 = sbr.rel (!%p15_p5) target bundleno = 6 (0x6), region = 81 }
 0x26c   :  { %1732 = vsyncpa [#allocation5], 1 }
 0x26d   :  { %1734 = vsyncpa [#allocation5 + $0x1], 1 }
 0x26e   :  { %1735 = vsyncpa [#allocation6], 1 }
 0x26f   :  { %1737 = vsyncpa [#allocation6 + $0x1], 1 }

</bundles_post_ra>
